<compile_context>
chip_gen: v6e
topology: v6e:2x2x1
jax: 0.10.0
libtpu: 0.0.40
codegen_flags: <defaults>
</compile_context>

<pallas_src>
import functools

import jax
import jax.numpy as jnp
from jax.experimental import pallas as pl
from jax.experimental.pallas import tpu as pltpu


# ----------------------------------------------------------------------------
# Fused Pallas kernel (input projection + all LSTM layers + linear head)
# ----------------------------------------------------------------------------
def _make_fused_lstm_kernel(num_layers, seq_len, predict_len, batch, hidden):
    L, T, P, B, H = num_layers, seq_len, predict_len, batch, hidden

    def kernel(*refs):
        # ---- input refs ----
        x_ref    = refs[0]                    # (T*B, D)  time-major flattened input
        h0_ref   = refs[1]                    # (L, B, H)
        c0_ref   = refs[2]                    # (L, B, H)
        wih0_ref = refs[3]                    # (D, 4H)   layer-0 W_ih^T
        b0_ref   = refs[4]                    # (1, 4H)   layer-0 b_ih + b_hh
        whh_refs = refs[5:5 + L]              # (H, 4H)   W_hh^T, layers 0..L-1
        wih_refs = refs[5 + L:4 + 2 * L]      # (H, 4H)   W_ih^T, layers 1..L-1
        b_refs   = refs[4 + 2 * L:3 + 3 * L]  # (1, 4H)   b_ih+b_hh, layers 1..L-1
        lin_w_ref = refs[3 + 3 * L]           # (H, O)
        lin_b_ref = refs[4 + 3 * L]           # (1, O)
        # ---- output refs ----
        out_ref = refs[5 + 3 * L]             # (P*B, O)  head output, time-major rows
        hn_ref  = refs[6 + 3 * L]             # (L, B, H)
        cn_ref  = refs[7 + 3 * L]             # (L, B, H)
        # ---- scratch ----
        htail_ref = refs[8 + 3 * L]           # (P*B, H)  VMEM f32: last-P hidden states

        # Fused layer-0 input projection (off the serial h chain): one batched
        # matmul in the preamble, no wrapper einsum, no (T,B,4H) HBM round trip.
        xw0 = (jnp.dot(x_ref[...], wih0_ref[...],
                       preferred_element_type=jnp.float32)
               + b0_ref[...])                 # (T*B, 4H) f32

        xs = None   # per-timestep pre-projected gate inputs for the current layer
        for l in range(L):
            h = h0_ref[l].astype(jnp.float32)     # (B, H)
            c = c0_ref[l].astype(jnp.float32)     # (B, H)
            whh = whh_refs[l][...]                # (H, 4H)
            is_last = (l == L - 1)
            if not is_last:
                wih_nxt = wih_refs[l][...]        # layer l+1 weights, (H, 4H)
                # Hoisted bias broadcast (once per layer, not per timestep).
                b_nxt = jnp.broadcast_to(b_refs[l][...], (B, 4 * H))

            nxt = []
            for t in range(T):                    # static unroll (small fixed T)
                if l == 0:
                    pre = xw0[t * B:(t + 1) * B, :]           # (B, 4H)
                else:
                    pre = xs[t]
                gates = pre + jnp.dot(h.astype(whh.dtype), whh,
                                      preferred_element_type=jnp.float32)
                # Two full-width transcendental pushes over the whole (B, 4H)
                # vreg, then cheap slicing of already-activated data.
                sg = jax.nn.sigmoid(gates)
                tg = jnp.tanh(gates)
                i_g = sg[:, 0 * H:1 * H]
                f_g = sg[:, 1 * H:2 * H]
                o_g = sg[:, 3 * H:4 * H]
                g_g = tg[:, 2 * H:3 * H]
                c = f_g * c + i_g * g_g
                h = o_g * jnp.tanh(c)

                if is_last:
                    if t >= T - P:
                        # Stash hidden state; head is one batched dot + one
                        # store after the loop (no per-t tiny dots / stores).
                        idx = t - (T - P)
                        htail_ref[pl.ds(idx * B, B), :] = h
                else:
                    # Layer l+1's input projection hoisted into layer l's time
                    # loop (off layer l+1's serial h-dependency chain).
                    nxt.append(jnp.dot(h.astype(wih_nxt.dtype), wih_nxt,
                                       preferred_element_type=jnp.float32)
                               + b_nxt)

            hn_ref[l] = h.astype(hn_ref.dtype)
            cn_ref[l] = c.astype(cn_ref.dtype)
            xs = nxt

        # Batched linear head: ONE (P*B, H) @ (H, O) matmul and ONE store.
        hs = htail_ref[...]
        lin_w = lin_w_ref[...]
        head = (jnp.dot(hs.astype(lin_w.dtype), lin_w,
                        preferred_element_type=jnp.float32)
                + lin_b_ref[...])
        out_ref[...] = head.astype(out_ref.dtype)
        # TODO(synk): inter-layer dropout omitted (inference / eval semantics).

    return kernel


def _full_block_spec(shape):
    nd = len(shape)
    return pl.BlockSpec(shape, lambda i, _nd=nd: (0,) * _nd)


# ----------------------------------------------------------------------------
# Parameters: PyTorch-layout init + one-time kernel-ready preparation
# ----------------------------------------------------------------------------
def init_params(key, cfgs):
    D, H, L, O = (cfgs['input_size'], cfgs['hidden_size'],
                  cfgs['num_layers'], cfgs['output_size'])
    bound = 1.0 / jnp.sqrt(H)
    params = {'lstm': []}
    for l in range(L):
        in_dim = D if l == 0 else H
        key, k1, k2, k3, k4 = jax.random.split(key, 5)
        params['lstm'].append(dict(
            w_ih=jax.random.uniform(k1, (4 * H, in_dim), jnp.float32, -bound, bound),
            w_hh=jax.random.uniform(k2, (4 * H, H), jnp.float32, -bound, bound),
            b_ih=jax.random.uniform(k3, (4 * H,), jnp.float32, -bound, bound),
            b_hh=jax.random.uniform(k4, (4 * H,), jnp.float32, -bound, bound),
        ))
    key, k1, k2 = jax.random.split(key, 3)
    params['lin_w'] = jax.random.uniform(k1, (O, H), jnp.float32, -bound, bound)
    params['lin_b'] = jax.random.uniform(k2, (O,), jnp.float32, -bound, bound)
    return params


def prepare_params(params, mxu_dtype=jnp.float32):
    """Transpose weights / pre-sum biases ONCE (not inside every forward).

    mxu_dtype=jnp.bfloat16 stores MXU operands (W_ih, W_hh, lin_w) in bf16 for
    v6e/v7x (halves weight VMEM/DMA); biases, gate math and c/h state stay f32.
    """
    prep = {'wih': [], 'whh': [], 'bias': []}
    for p in params['lstm']:
        prep['wih'].append(jnp.asarray(p['w_ih'].T, mxu_dtype))                  # (in, 4H)
        prep['whh'].append(jnp.asarray(p['w_hh'].T, mxu_dtype))                  # (H, 4H)
        prep['bias'].append(jnp.asarray((p['b_ih'] + p['b_hh'])[None, :],
                                        jnp.float32))                            # (1, 4H)
    prep['lin_w'] = jnp.asarray(params['lin_w'].T, mxu_dtype)                    # (H, O)
    prep['lin_b'] = jnp.asarray(params['lin_b'][None, :], jnp.float32)           # (1, O)
    return prep


# ----------------------------------------------------------------------------
# Forward (mirrors LSTMnet.forward, batch_first=True)
# ----------------------------------------------------------------------------
def lstmnet_forward(prep, cfgs, x, h_n=None, c_n=None):
    B, T, D = x.shape
    H, L = cfgs['hidden_size'], cfgs['num_layers']
    P, O = cfgs['predict_data'], cfgs['output_size']
    assert P <= T
    mxu_dtype = prep['whh'][0].dtype
    if h_n is None or c_n is None:
        h_n = jnp.zeros((L, B, H), jnp.float32)
        c_n = jnp.zeros((L, B, H), jnp.float32)

    # Only a trivial layout shuffle of the small raw input remains outside the
    # kernel; the 4H-wide projection happens inside the kernel preamble now.
    x2d = jnp.transpose(x, (1, 0, 2)).reshape(T * B, D).astype(mxu_dtype)

    args = ([x2d, h_n, c_n, prep['wih'][0], prep['bias'][0]]
            + list(prep['whh'])
            + list(prep['wih'][1:])
            + list(prep['bias'][1:])
            + [prep['lin_w'], prep['lin_b']])

    out_shapes = (
        jax.ShapeDtypeStruct((P * B, O), jnp.float32),   # head output (time-major rows)
        jax.ShapeDtypeStruct((L, B, H), jnp.float32),    # h_n
        jax.ShapeDtypeStruct((L, B, H), jnp.float32),    # c_n
    )
    grid_spec = pltpu.PrefetchScalarGridSpec(
        num_scalar_prefetch=0,
        grid=(1,),                                       # whole recurrence in one step
        in_specs=[_full_block_spec(a.shape) for a in args],
        out_specs=[_full_block_spec(s.shape) for s in out_shapes],
        scratch_shapes=[pltpu.VMEM((P * B, H), jnp.float32)],
    )
    kernel = _make_fused_lstm_kernel(L, T, P, B, H)
    out_flat, hn, cn = pl.pallas_call(
        kernel,
        out_shape=out_shapes,
        grid_spec=grid_spec,
        compiler_params=pltpu.CompilerParams(
            dimension_semantics=("arbitrary",)),
    )(*args)

    out = out_flat.reshape(P, B, O).transpose(1, 0, 2)   # (B, P, O) == .view(-1, P, O)
    return out, (hn, cn)


# ----------------------------------------------------------------------------
# Pure-JAX reference (sanity check)
# ----------------------------------------------------------------------------
def _ref_forward(params, cfgs, x):
    B, T, D = x.shape
    H, L = cfgs['hidden_size'], cfgs['num_layers']
    P, O = cfgs['predict_data'], cfgs['output_size']
    layer_in = x
    hs, cs = [], []
    for l in range(L):
        p = params['lstm'][l]
        h = jnp.zeros((B, H), jnp.float32)
        c = jnp.zeros((B, H), jnp.float32)
        ys = []
        for t in range(T):
            g = (layer_in[:, t, :] @ p['w_ih'].T + p['b_ih']
                 + h @ p['w_hh'].T + p['b_hh'])
            i = jax.nn.sigmoid(g[:, 0*H:1*H]); f = jax.nn.sigmoid(g[:, 1*H:2*H])
            gg = jnp.tanh(g[:, 2*H:3*H]); o = jax.nn.sigmoid(g[:, 3*H:4*H])
            c = f * c + i * gg
            h = o * jnp.tanh(c)
            ys.append(h)
        layer_in = jnp.stack(ys, axis=1)
        hs.append(h); cs.append(c)
    last = layer_in[:, -P:, :]
    out = last @ params['lin_w'].T + params['lin_b']
    return out.reshape(-1, P, O), (jnp.stack(hs), jnp.stack(cs))


if __name__ == "__main__":
    cfgs = dict(input_size=8, hidden_size=32, num_layers=2,
                batch_first=True, dropout_rate=0.0,
                output_size=8, predict_data=4)
    B, T = 2, 8

    key = jax.random.PRNGKey(0)
    key, kx = jax.random.split(key)
    x = jax.random.normal(kx, (B, T, cfgs['input_size']), jnp.float32)
    params = init_params(key, cfgs)
    # f32 MXU operands here so the 1e-4 check holds; use mxu_dtype=jnp.bfloat16
    # on v6e/v7x at larger H (loosen tolerance accordingly).
    prep = prepare_params(params, mxu_dtype=jnp.float32)

    fwd = jax.jit(functools.partial(lstmnet_forward, prep, cfgs))
    out, (h_n, c_n) = fwd(x)
    jax.block_until_ready((out, h_n, c_n))

    # sanity check vs pure-JAX reference
    ref_out, (ref_h, ref_c) = _ref_forward(params, cfgs, x)
    assert out.shape == (B, cfgs['predict_data'], cfgs['output_size'])
    assert h_n.shape == (cfgs['num_layers'], B, cfgs['hidden_size'])
    assert c_n.shape == (cfgs['num_layers'], B, cfgs['hidden_size'])
    assert jnp.allclose(out, ref_out, atol=1e-4)
    assert jnp.allclose(h_n, ref_h, atol=1e-4)
    assert jnp.allclose(c_n, ref_c, atol=1e-4)

    print("KERNEL_OK")
</pallas_src>

<mosaic_0001>
module attributes {stable_mosaic.version = 11 : i64} {
  func.func @kernel(%arg0: i32, %arg1: memref<16x8xf32, #tpu.memory_space<vmem>>, %arg2: memref<2x2x32xf32, #tpu.memory_space<vmem>>, %arg3: memref<2x2x32xf32, #tpu.memory_space<vmem>>, %arg4: memref<8x128xf32, #tpu.memory_space<vmem>>, %arg5: memref<1x128xf32, #tpu.memory_space<vmem>>, %arg6: memref<32x128xf32, #tpu.memory_space<vmem>>, %arg7: memref<32x128xf32, #tpu.memory_space<vmem>>, %arg8: memref<32x128xf32, #tpu.memory_space<vmem>>, %arg9: memref<1x128xf32, #tpu.memory_space<vmem>>, %arg10: memref<32x8xf32, #tpu.memory_space<vmem>>, %arg11: memref<1x8xf32, #tpu.memory_space<vmem>>, %arg12: memref<8x8xf32, #tpu.memory_space<vmem>>, %arg13: memref<2x2x32xf32, #tpu.memory_space<vmem>>, %arg14: memref<2x2x32xf32, #tpu.memory_space<vmem>>, %arg15: memref<8x32xf32, #tpu.memory_space<vmem>>) attributes {dimension_semantics = [#tpu.dimension_semantics<arbitrary>], iteration_bounds = array<i64: 1>, scalar_prefetch = 0 : i64, scratch_operands = 1 : i64, tpu.core_type = #tpu.core_type<tc>, window_params = [{pipeline_mode = #tpu.pipeline_mode<synchronous>, transform_indices = @transform_0, window_bounds = array<i64: 16, 8>}, {pipeline_mode = #tpu.pipeline_mode<synchronous>, transform_indices = @transform_1, window_bounds = array<i64: 2, 2, 32>}, {pipeline_mode = #tpu.pipeline_mode<synchronous>, transform_indices = @transform_2, window_bounds = array<i64: 2, 2, 32>}, {pipeline_mode = #tpu.pipeline_mode<synchronous>, transform_indices = @transform_3, window_bounds = array<i64: 8, 128>}, {pipeline_mode = #tpu.pipeline_mode<synchronous>, transform_indices = @transform_4, window_bounds = array<i64: 1, 128>}, {pipeline_mode = #tpu.pipeline_mode<synchronous>, transform_indices = @transform_5, window_bounds = array<i64: 32, 128>}, {pipeline_mode = #tpu.pipeline_mode<synchronous>, transform_indices = @transform_6, window_bounds = array<i64: 32, 128>}, {pipeline_mode = #tpu.pipeline_mode<synchronous>, transform_indices = @transform_7, window_bounds = array<i64: 32, 128>}, {pipeline_mode = #tpu.pipeline_mode<synchronous>, transform_indices = @transform_8, window_bounds = array<i64: 1, 128>}, {pipeline_mode = #tpu.pipeline_mode<synchronous>, transform_indices = @transform_9, window_bounds = array<i64: 32, 8>}, {pipeline_mode = #tpu.pipeline_mode<synchronous>, transform_indices = @transform_10, window_bounds = array<i64: 1, 8>}, {pipeline_mode = #tpu.pipeline_mode<synchronous>, transform_indices = @transform_11, window_bounds = array<i64: 8, 8>}, {pipeline_mode = #tpu.pipeline_mode<synchronous>, transform_indices = @transform_12, window_bounds = array<i64: 2, 2, 32>}, {pipeline_mode = #tpu.pipeline_mode<synchronous>, transform_indices = @transform_13, window_bounds = array<i64: 2, 2, 32>}]} {
    %c0 = arith.constant 0 : index
    %c0_0 = arith.constant 0 : index
    %0 = vector.load %arg1[%c0, %c0_0] : memref<16x8xf32, #tpu.memory_space<vmem>>, vector<16x8xf32>
    %c0_1 = arith.constant 0 : index
    %c0_2 = arith.constant 0 : index
    %1 = vector.load %arg4[%c0_1, %c0_2] : memref<8x128xf32, #tpu.memory_space<vmem>>, vector<8x128xf32>
    %cst = arith.constant dense<0.000000e+00> : vector<16x128xf32>
    %2 = tpu.matmul %0, %1, %cst {dimension_numbers = #tpu.dot_dimension_numbers<[1], [0], [0], [1], [0, 0, 1, 1], [], []>} : vector<16x8xf32>, vector<8x128xf32>, vector<16x128xf32> -> vector<16x128xf32>
    %c0_3 = arith.constant 0 : index
    %c0_4 = arith.constant 0 : index
    %3 = vector.load %arg5[%c0_3, %c0_4] : memref<1x128xf32, #tpu.memory_space<vmem>>, vector<1x128xf32>
    %4 = vector.broadcast %3 : vector<1x128xf32> to vector<16x128xf32>
    %5 = arith.addf %2, %4 : vector<16x128xf32>
    %c0_5 = arith.constant 0 : index
    %c0_6 = arith.constant 0 : index
    %c0_7 = arith.constant 0 : index
    %6 = vector.load %arg2[%c0_5, %c0_6, %c0_7] : memref<2x2x32xf32, #tpu.memory_space<vmem>>, vector<1x2x32xf32>
    %7 = vector.shape_cast %6 : vector<1x2x32xf32> to vector<2x32xf32>
    %c0_8 = arith.constant 0 : index
    %c0_9 = arith.constant 0 : index
    %c0_10 = arith.constant 0 : index
    %8 = vector.load %arg3[%c0_8, %c0_9, %c0_10] : memref<2x2x32xf32, #tpu.memory_space<vmem>>, vector<1x2x32xf32>
    %9 = vector.shape_cast %8 : vector<1x2x32xf32> to vector<2x32xf32>
    %c0_11 = arith.constant 0 : index
    %c0_12 = arith.constant 0 : index
    %10 = vector.load %arg6[%c0_11, %c0_12] : memref<32x128xf32, #tpu.memory_space<vmem>>, vector<32x128xf32>
    %c0_13 = arith.constant 0 : index
    %c0_14 = arith.constant 0 : index
    %11 = vector.load %arg8[%c0_13, %c0_14] : memref<32x128xf32, #tpu.memory_space<vmem>>, vector<32x128xf32>
    %c0_15 = arith.constant 0 : index
    %c0_16 = arith.constant 0 : index
    %12 = vector.load %arg9[%c0_15, %c0_16] : memref<1x128xf32, #tpu.memory_space<vmem>>, vector<1x128xf32>
    %13 = vector.shape_cast %12 : vector<1x128xf32> to vector<1x128xf32>
    %14 = vector.broadcast %13 : vector<1x128xf32> to vector<2x128xf32>
    %15 = vector.extract_strided_slice %5 {offsets = [0, 0], sizes = [2, 128], strides = [1, 1]} : vector<16x128xf32> to vector<2x128xf32>
    %cst_17 = arith.constant dense<0.000000e+00> : vector<2x128xf32>
    %16 = tpu.matmul %7, %10, %cst_17 {dimension_numbers = #tpu.dot_dimension_numbers<[1], [0], [0], [1], [0, 0, 1, 1], [], []>} : vector<2x32xf32>, vector<32x128xf32>, vector<2x128xf32> -> vector<2x128xf32>
    %17 = arith.addf %15, %16 : vector<2x128xf32>
    %18 = arith.negf %17 : vector<2x128xf32>
    %19 = math.exp %18 : vector<2x128xf32>
    %cst_18 = arith.constant 1.000000e+00 : f32
    %20 = vector.broadcast %cst_18 : f32 to vector<2x128xf32>
    %21 = arith.addf %20, %19 : vector<2x128xf32>
    %22 = arith.divf %20, %21 : vector<2x128xf32>
    %23 = math.tanh %17 : vector<2x128xf32>
    %24 = vector.extract_strided_slice %22 {offsets = [0, 0], sizes = [2, 32], strides = [1, 1]} : vector<2x128xf32> to vector<2x32xf32>
    %25 = vector.extract_strided_slice %22 {offsets = [0, 32], sizes = [2, 32], strides = [1, 1]} : vector<2x128xf32> to vector<2x32xf32>
    %26 = vector.extract_strided_slice %22 {offsets = [0, 96], sizes = [2, 32], strides = [1, 1]} : vector<2x128xf32> to vector<2x32xf32>
    %27 = vector.extract_strided_slice %23 {offsets = [0, 64], sizes = [2, 32], strides = [1, 1]} : vector<2x128xf32> to vector<2x32xf32>
    %28 = arith.mulf %25, %9 : vector<2x32xf32>
    %29 = arith.mulf %24, %27 : vector<2x32xf32>
    %30 = arith.addf %28, %29 : vector<2x32xf32>
    %31 = math.tanh %30 : vector<2x32xf32>
    %32 = arith.mulf %26, %31 : vector<2x32xf32>
    %cst_19 = arith.constant dense<0.000000e+00> : vector<2x128xf32>
    %33 = tpu.matmul %32, %11, %cst_19 {dimension_numbers = #tpu.dot_dimension_numbers<[1], [0], [0], [1], [0, 0, 1, 1], [], []>} : vector<2x32xf32>, vector<32x128xf32>, vector<2x128xf32> -> vector<2x128xf32>
    %34 = arith.addf %33, %14 : vector<2x128xf32>
    %35 = vector.extract_strided_slice %5 {offsets = [2, 0], sizes = [2, 128], strides = [1, 1]} : vector<16x128xf32> to vector<2x128xf32>
    %cst_20 = arith.constant dense<0.000000e+00> : vector<2x128xf32>
    %36 = tpu.matmul %32, %10, %cst_20 {dimension_numbers = #tpu.dot_dimension_numbers<[1], [0], [0], [1], [0, 0, 1, 1], [], []>} : vector<2x32xf32>, vector<32x128xf32>, vector<2x128xf32> -> vector<2x128xf32>
    %37 = arith.addf %35, %36 : vector<2x128xf32>
    %38 = arith.negf %37 : vector<2x128xf32>
    %39 = math.exp %38 : vector<2x128xf32>
    %cst_21 = arith.constant 1.000000e+00 : f32
    %40 = vector.broadcast %cst_21 : f32 to vector<2x128xf32>
    %41 = arith.addf %40, %39 : vector<2x128xf32>
    %42 = arith.divf %40, %41 : vector<2x128xf32>
    %43 = math.tanh %37 : vector<2x128xf32>
    %44 = vector.extract_strided_slice %42 {offsets = [0, 0], sizes = [2, 32], strides = [1, 1]} : vector<2x128xf32> to vector<2x32xf32>
    %45 = vector.extract_strided_slice %42 {offsets = [0, 32], sizes = [2, 32], strides = [1, 1]} : vector<2x128xf32> to vector<2x32xf32>
    %46 = vector.extract_strided_slice %42 {offsets = [0, 96], sizes = [2, 32], strides = [1, 1]} : vector<2x128xf32> to vector<2x32xf32>
    %47 = vector.extract_strided_slice %43 {offsets = [0, 64], sizes = [2, 32], strides = [1, 1]} : vector<2x128xf32> to vector<2x32xf32>
    %48 = arith.mulf %45, %30 : vector<2x32xf32>
    %49 = arith.mulf %44, %47 : vector<2x32xf32>
    %50 = arith.addf %48, %49 : vector<2x32xf32>
    %51 = math.tanh %50 : vector<2x32xf32>
    %52 = arith.mulf %46, %51 : vector<2x32xf32>
    %cst_22 = arith.constant dense<0.000000e+00> : vector<2x128xf32>
    %53 = tpu.matmul %52, %11, %cst_22 {dimension_numbers = #tpu.dot_dimension_numbers<[1], [0], [0], [1], [0, 0, 1, 1], [], []>} : vector<2x32xf32>, vector<32x128xf32>, vector<2x128xf32> -> vector<2x128xf32>
    %54 = arith.addf %53, %14 : vector<2x128xf32>
    %55 = vector.extract_strided_slice %5 {offsets = [4, 0], sizes = [2, 128], strides = [1, 1]} : vector<16x128xf32> to vector<2x128xf32>
    %cst_23 = arith.constant dense<0.000000e+00> : vector<2x128xf32>
    %56 = tpu.matmul %52, %10, %cst_23 {dimension_numbers = #tpu.dot_dimension_numbers<[1], [0], [0], [1], [0, 0, 1, 1], [], []>} : vector<2x32xf32>, vector<32x128xf32>, vector<2x128xf32> -> vector<2x128xf32>
    %57 = arith.addf %55, %56 : vector<2x128xf32>
    %58 = arith.negf %57 : vector<2x128xf32>
    %59 = math.exp %58 : vector<2x128xf32>
    %cst_24 = arith.constant 1.000000e+00 : f32
    %60 = vector.broadcast %cst_24 : f32 to vector<2x128xf32>
    %61 = arith.addf %60, %59 : vector<2x128xf32>
    %62 = arith.divf %60, %61 : vector<2x128xf32>
    %63 = math.tanh %57 : vector<2x128xf32>
    %64 = vector.extract_strided_slice %62 {offsets = [0, 0], sizes = [2, 32], strides = [1, 1]} : vector<2x128xf32> to vector<2x32xf32>
    %65 = vector.extract_strided_slice %62 {offsets = [0, 32], sizes = [2, 32], strides = [1, 1]} : vector<2x128xf32> to vector<2x32xf32>
    %66 = vector.extract_strided_slice %62 {offsets = [0, 96], sizes = [2, 32], strides = [1, 1]} : vector<2x128xf32> to vector<2x32xf32>
    %67 = vector.extract_strided_slice %63 {offsets = [0, 64], sizes = [2, 32], strides = [1, 1]} : vector<2x128xf32> to vector<2x32xf32>
    %68 = arith.mulf %65, %50 : vector<2x32xf32>
    %69 = arith.mulf %64, %67 : vector<2x32xf32>
    %70 = arith.addf %68, %69 : vector<2x32xf32>
    %71 = math.tanh %70 : vector<2x32xf32>
    %72 = arith.mulf %66, %71 : vector<2x32xf32>
    %cst_25 = arith.constant dense<0.000000e+00> : vector<2x128xf32>
    %73 = tpu.matmul %72, %11, %cst_25 {dimension_numbers = #tpu.dot_dimension_numbers<[1], [0], [0], [1], [0, 0, 1, 1], [], []>} : vector<2x32xf32>, vector<32x128xf32>, vector<2x128xf32> -> vector<2x128xf32>
    %74 = arith.addf %73, %14 : vector<2x128xf32>
    %75 = vector.extract_strided_slice %5 {offsets = [6, 0], sizes = [2, 128], strides = [1, 1]} : vector<16x128xf32> to vector<2x128xf32>
    %cst_26 = arith.constant dense<0.000000e+00> : vector<2x128xf32>
    %76 = tpu.matmul %72, %10, %cst_26 {dimension_numbers = #tpu.dot_dimension_numbers<[1], [0], [0], [1], [0, 0, 1, 1], [], []>} : vector<2x32xf32>, vector<32x128xf32>, vector<2x128xf32> -> vector<2x128xf32>
    %77 = arith.addf %75, %76 : vector<2x128xf32>
    %78 = arith.negf %77 : vector<2x128xf32>
    %79 = math.exp %78 : vector<2x128xf32>
    %cst_27 = arith.constant 1.000000e+00 : f32
    %80 = vector.broadcast %cst_27 : f32 to vector<2x128xf32>
    %81 = arith.addf %80, %79 : vector<2x128xf32>
    %82 = arith.divf %80, %81 : vector<2x128xf32>
    %83 = math.tanh %77 : vector<2x128xf32>
    %84 = vector.extract_strided_slice %82 {offsets = [0, 0], sizes = [2, 32], strides = [1, 1]} : vector<2x128xf32> to vector<2x32xf32>
    %85 = vector.extract_strided_slice %82 {offsets = [0, 32], sizes = [2, 32], strides = [1, 1]} : vector<2x128xf32> to vector<2x32xf32>
    %86 = vector.extract_strided_slice %82 {offsets = [0, 96], sizes = [2, 32], strides = [1, 1]} : vector<2x128xf32> to vector<2x32xf32>
    %87 = vector.extract_strided_slice %83 {offsets = [0, 64], sizes = [2, 32], strides = [1, 1]} : vector<2x128xf32> to vector<2x32xf32>
    %88 = arith.mulf %85, %70 : vector<2x32xf32>
    %89 = arith.mulf %84, %87 : vector<2x32xf32>
    %90 = arith.addf %88, %89 : vector<2x32xf32>
    %91 = math.tanh %90 : vector<2x32xf32>
    %92 = arith.mulf %86, %91 : vector<2x32xf32>
    %cst_28 = arith.constant dense<0.000000e+00> : vector<2x128xf32>
    %93 = tpu.matmul %92, %11, %cst_28 {dimension_numbers = #tpu.dot_dimension_numbers<[1], [0], [0], [1], [0, 0, 1, 1], [], []>} : vector<2x32xf32>, vector<32x128xf32>, vector<2x128xf32> -> vector<2x128xf32>
    %94 = arith.addf %93, %14 : vector<2x128xf32>
    %95 = vector.extract_strided_slice %5 {offsets = [8, 0], sizes = [2, 128], strides = [1, 1]} : vector<16x128xf32> to vector<2x128xf32>
    %cst_29 = arith.constant dense<0.000000e+00> : vector<2x128xf32>
    %96 = tpu.matmul %92, %10, %cst_29 {dimension_numbers = #tpu.dot_dimension_numbers<[1], [0], [0], [1], [0, 0, 1, 1], [], []>} : vector<2x32xf32>, vector<32x128xf32>, vector<2x128xf32> -> vector<2x128xf32>
    %97 = arith.addf %95, %96 : vector<2x128xf32>
    %98 = arith.negf %97 : vector<2x128xf32>
    %99 = math.exp %98 : vector<2x128xf32>
    %cst_30 = arith.constant 1.000000e+00 : f32
    %100 = vector.broadcast %cst_30 : f32 to vector<2x128xf32>
    %101 = arith.addf %100, %99 : vector<2x128xf32>
    %102 = arith.divf %100, %101 : vector<2x128xf32>
    %103 = math.tanh %97 : vector<2x128xf32>
    %104 = vector.extract_strided_slice %102 {offsets = [0, 0], sizes = [2, 32], strides = [1, 1]} : vector<2x128xf32> to vector<2x32xf32>
    %105 = vector.extract_strided_slice %102 {offsets = [0, 32], sizes = [2, 32], strides = [1, 1]} : vector<2x128xf32> to vector<2x32xf32>
    %106 = vector.extract_strided_slice %102 {offsets = [0, 96], sizes = [2, 32], strides = [1, 1]} : vector<2x128xf32> to vector<2x32xf32>
    %107 = vector.extract_strided_slice %103 {offsets = [0, 64], sizes = [2, 32], strides = [1, 1]} : vector<2x128xf32> to vector<2x32xf32>
    %108 = arith.mulf %105, %90 : vector<2x32xf32>
    %109 = arith.mulf %104, %107 : vector<2x32xf32>
    %110 = arith.addf %108, %109 : vector<2x32xf32>
    %111 = math.tanh %110 : vector<2x32xf32>
    %112 = arith.mulf %106, %111 : vector<2x32xf32>
    %cst_31 = arith.constant dense<0.000000e+00> : vector<2x128xf32>
    %113 = tpu.matmul %112, %11, %cst_31 {dimension_numbers = #tpu.dot_dimension_numbers<[1], [0], [0], [1], [0, 0, 1, 1], [], []>} : vector<2x32xf32>, vector<32x128xf32>, vector<2x128xf32> -> vector<2x128xf32>
    %114 = arith.addf %113, %14 : vector<2x128xf32>
    %115 = vector.extract_strided_slice %5 {offsets = [10, 0], sizes = [2, 128], strides = [1, 1]} : vector<16x128xf32> to vector<2x128xf32>
    %cst_32 = arith.constant dense<0.000000e+00> : vector<2x128xf32>
    %116 = tpu.matmul %112, %10, %cst_32 {dimension_numbers = #tpu.dot_dimension_numbers<[1], [0], [0], [1], [0, 0, 1, 1], [], []>} : vector<2x32xf32>, vector<32x128xf32>, vector<2x128xf32> -> vector<2x128xf32>
    %117 = arith.addf %115, %116 : vector<2x128xf32>
    %118 = arith.negf %117 : vector<2x128xf32>
    %119 = math.exp %118 : vector<2x128xf32>
    %cst_33 = arith.constant 1.000000e+00 : f32
    %120 = vector.broadcast %cst_33 : f32 to vector<2x128xf32>
    %121 = arith.addf %120, %119 : vector<2x128xf32>
    %122 = arith.divf %120, %121 : vector<2x128xf32>
    %123 = math.tanh %117 : vector<2x128xf32>
    %124 = vector.extract_strided_slice %122 {offsets = [0, 0], sizes = [2, 32], strides = [1, 1]} : vector<2x128xf32> to vector<2x32xf32>
    %125 = vector.extract_strided_slice %122 {offsets = [0, 32], sizes = [2, 32], strides = [1, 1]} : vector<2x128xf32> to vector<2x32xf32>
    %126 = vector.extract_strided_slice %122 {offsets = [0, 96], sizes = [2, 32], strides = [1, 1]} : vector<2x128xf32> to vector<2x32xf32>
    %127 = vector.extract_strided_slice %123 {offsets = [0, 64], sizes = [2, 32], strides = [1, 1]} : vector<2x128xf32> to vector<2x32xf32>
    %128 = arith.mulf %125, %110 : vector<2x32xf32>
    %129 = arith.mulf %124, %127 : vector<2x32xf32>
    %130 = arith.addf %128, %129 : vector<2x32xf32>
    %131 = math.tanh %130 : vector<2x32xf32>
    %132 = arith.mulf %126, %131 : vector<2x32xf32>
    %cst_34 = arith.constant dense<0.000000e+00> : vector<2x128xf32>
    %133 = tpu.matmul %132, %11, %cst_34 {dimension_numbers = #tpu.dot_dimension_numbers<[1], [0], [0], [1], [0, 0, 1, 1], [], []>} : vector<2x32xf32>, vector<32x128xf32>, vector<2x128xf32> -> vector<2x128xf32>
    %134 = arith.addf %133, %14 : vector<2x128xf32>
    %135 = vector.extract_strided_slice %5 {offsets = [12, 0], sizes = [2, 128], strides = [1, 1]} : vector<16x128xf32> to vector<2x128xf32>
    %cst_35 = arith.constant dense<0.000000e+00> : vector<2x128xf32>
    %136 = tpu.matmul %132, %10, %cst_35 {dimension_numbers = #tpu.dot_dimension_numbers<[1], [0], [0], [1], [0, 0, 1, 1], [], []>} : vector<2x32xf32>, vector<32x128xf32>, vector<2x128xf32> -> vector<2x128xf32>
    %137 = arith.addf %135, %136 : vector<2x128xf32>
    %138 = arith.negf %137 : vector<2x128xf32>
    %139 = math.exp %138 : vector<2x128xf32>
    %cst_36 = arith.constant 1.000000e+00 : f32
    %140 = vector.broadcast %cst_36 : f32 to vector<2x128xf32>
    %141 = arith.addf %140, %139 : vector<2x128xf32>
    %142 = arith.divf %140, %141 : vector<2x128xf32>
    %143 = math.tanh %137 : vector<2x128xf32>
    %144 = vector.extract_strided_slice %142 {offsets = [0, 0], sizes = [2, 32], strides = [1, 1]} : vector<2x128xf32> to vector<2x32xf32>
    %145 = vector.extract_strided_slice %142 {offsets = [0, 32], sizes = [2, 32], strides = [1, 1]} : vector<2x128xf32> to vector<2x32xf32>
    %146 = vector.extract_strided_slice %142 {offsets = [0, 96], sizes = [2, 32], strides = [1, 1]} : vector<2x128xf32> to vector<2x32xf32>
    %147 = vector.extract_strided_slice %143 {offsets = [0, 64], sizes = [2, 32], strides = [1, 1]} : vector<2x128xf32> to vector<2x32xf32>
    %148 = arith.mulf %145, %130 : vector<2x32xf32>
    %149 = arith.mulf %144, %147 : vector<2x32xf32>
    %150 = arith.addf %148, %149 : vector<2x32xf32>
    %151 = math.tanh %150 : vector<2x32xf32>
    %152 = arith.mulf %146, %151 : vector<2x32xf32>
    %cst_37 = arith.constant dense<0.000000e+00> : vector<2x128xf32>
    %153 = tpu.matmul %152, %11, %cst_37 {dimension_numbers = #tpu.dot_dimension_numbers<[1], [0], [0], [1], [0, 0, 1, 1], [], []>} : vector<2x32xf32>, vector<32x128xf32>, vector<2x128xf32> -> vector<2x128xf32>
    %154 = arith.addf %153, %14 : vector<2x128xf32>
    %155 = vector.extract_strided_slice %5 {offsets = [14, 0], sizes = [2, 128], strides = [1, 1]} : vector<16x128xf32> to vector<2x128xf32>
    %cst_38 = arith.constant dense<0.000000e+00> : vector<2x128xf32>
    %156 = tpu.matmul %152, %10, %cst_38 {dimension_numbers = #tpu.dot_dimension_numbers<[1], [0], [0], [1], [0, 0, 1, 1], [], []>} : vector<2x32xf32>, vector<32x128xf32>, vector<2x128xf32> -> vector<2x128xf32>
    %157 = arith.addf %155, %156 : vector<2x128xf32>
    %158 = arith.negf %157 : vector<2x128xf32>
    %159 = math.exp %158 : vector<2x128xf32>
    %cst_39 = arith.constant 1.000000e+00 : f32
    %160 = vector.broadcast %cst_39 : f32 to vector<2x128xf32>
    %161 = arith.addf %160, %159 : vector<2x128xf32>
    %162 = arith.divf %160, %161 : vector<2x128xf32>
    %163 = math.tanh %157 : vector<2x128xf32>
    %164 = vector.extract_strided_slice %162 {offsets = [0, 0], sizes = [2, 32], strides = [1, 1]} : vector<2x128xf32> to vector<2x32xf32>
    %165 = vector.extract_strided_slice %162 {offsets = [0, 32], sizes = [2, 32], strides = [1, 1]} : vector<2x128xf32> to vector<2x32xf32>
    %166 = vector.extract_strided_slice %162 {offsets = [0, 96], sizes = [2, 32], strides = [1, 1]} : vector<2x128xf32> to vector<2x32xf32>
    %167 = vector.extract_strided_slice %163 {offsets = [0, 64], sizes = [2, 32], strides = [1, 1]} : vector<2x128xf32> to vector<2x32xf32>
    %168 = arith.mulf %165, %150 : vector<2x32xf32>
    %169 = arith.mulf %164, %167 : vector<2x32xf32>
    %170 = arith.addf %168, %169 : vector<2x32xf32>
    %171 = math.tanh %170 : vector<2x32xf32>
    %172 = arith.mulf %166, %171 : vector<2x32xf32>
    %cst_40 = arith.constant dense<0.000000e+00> : vector<2x128xf32>
    %173 = tpu.matmul %172, %11, %cst_40 {dimension_numbers = #tpu.dot_dimension_numbers<[1], [0], [0], [1], [0, 0, 1, 1], [], []>} : vector<2x32xf32>, vector<32x128xf32>, vector<2x128xf32> -> vector<2x128xf32>
    %174 = arith.addf %173, %14 : vector<2x128xf32>
    %c0_41 = arith.constant 0 : index
    %c0_42 = arith.constant 0 : index
    %c0_43 = arith.constant 0 : index
    %175 = vector.load %arg13[%c0_41, %c0_42, %c0_43] : memref<2x2x32xf32, #tpu.memory_space<vmem>>, vector<1x2x32xf32>
    %176 = vector.shape_cast %175 : vector<1x2x32xf32> to vector<2x32xf32>
    %177 = vector.shape_cast %172 : vector<2x32xf32> to vector<1x2x32xf32>
    tpu.vector_store %arg13[%c0_41, %c0_42, %c0_43], %177 {strides = array<i32>} : memref<2x2x32xf32, #tpu.memory_space<vmem>>, vector<1x2x32xf32>,
    %c0_44 = arith.constant 0 : index
    %c0_45 = arith.constant 0 : index
    %c0_46 = arith.constant 0 : index
    %178 = vector.load %arg14[%c0_44, %c0_45, %c0_46] : memref<2x2x32xf32, #tpu.memory_space<vmem>>, vector<1x2x32xf32>
    %179 = vector.shape_cast %178 : vector<1x2x32xf32> to vector<2x32xf32>
    %180 = vector.shape_cast %170 : vector<2x32xf32> to vector<1x2x32xf32>
    tpu.vector_store %arg14[%c0_44, %c0_45, %c0_46], %180 {strides = array<i32>} : memref<2x2x32xf32, #tpu.memory_space<vmem>>, vector<1x2x32xf32>,
    %c1 = arith.constant 1 : index
    %c0_47 = arith.constant 0 : index
    %c0_48 = arith.constant 0 : index
    %181 = vector.load %arg2[%c1, %c0_47, %c0_48] : memref<2x2x32xf32, #tpu.memory_space<vmem>>, vector<1x2x32xf32>
    %182 = vector.shape_cast %181 : vector<1x2x32xf32> to vector<2x32xf32>
    %c1_49 = arith.constant 1 : index
    %c0_50 = arith.constant 0 : index
    %c0_51 = arith.constant 0 : index
    %183 = vector.load %arg3[%c1_49, %c0_50, %c0_51] : memref<2x2x32xf32, #tpu.memory_space<vmem>>, vector<1x2x32xf32>
    %184 = vector.shape_cast %183 : vector<1x2x32xf32> to vector<2x32xf32>
    %c0_52 = arith.constant 0 : index
    %c0_53 = arith.constant 0 : index
    %185 = vector.load %arg7[%c0_52, %c0_53] : memref<32x128xf32, #tpu.memory_space<vmem>>, vector<32x128xf32>
    %cst_54 = arith.constant dense<0.000000e+00> : vector<2x128xf32>
    %186 = tpu.matmul %182, %185, %cst_54 {dimension_numbers = #tpu.dot_dimension_numbers<[1], [0], [0], [1], [0, 0, 1, 1], [], []>} : vector<2x32xf32>, vector<32x128xf32>, vector<2x128xf32> -> vector<2x128xf32>
    %187 = arith.addf %34, %186 : vector<2x128xf32>
    %188 = arith.negf %187 : vector<2x128xf32>
    %189 = math.exp %188 : vector<2x128xf32>
    %cst_55 = arith.constant 1.000000e+00 : f32
    %190 = vector.broadcast %cst_55 : f32 to vector<2x128xf32>
    %191 = arith.addf %190, %189 : vector<2x128xf32>
    %192 = arith.divf %190, %191 : vector<2x128xf32>
    %193 = math.tanh %187 : vector<2x128xf32>
    %194 = vector.extract_strided_slice %192 {offsets = [0, 0], sizes = [2, 32], strides = [1, 1]} : vector<2x128xf32> to vector<2x32xf32>
    %195 = vector.extract_strided_slice %192 {offsets = [0, 32], sizes = [2, 32], strides = [1, 1]} : vector<2x128xf32> to vector<2x32xf32>
    %196 = vector.extract_strided_slice %192 {offsets = [0, 96], sizes = [2, 32], strides = [1, 1]} : vector<2x128xf32> to vector<2x32xf32>
    %197 = vector.extract_strided_slice %193 {offsets = [0, 64], sizes = [2, 32], strides = [1, 1]} : vector<2x128xf32> to vector<2x32xf32>
    %198 = arith.mulf %195, %184 : vector<2x32xf32>
    %199 = arith.mulf %194, %197 : vector<2x32xf32>
    %200 = arith.addf %198, %199 : vector<2x32xf32>
    %201 = math.tanh %200 : vector<2x32xf32>
    %202 = arith.mulf %196, %201 : vector<2x32xf32>
    %cst_56 = arith.constant dense<0.000000e+00> : vector<2x128xf32>
    %203 = tpu.matmul %202, %185, %cst_56 {dimension_numbers = #tpu.dot_dimension_numbers<[1], [0], [0], [1], [0, 0, 1, 1], [], []>} : vector<2x32xf32>, vector<32x128xf32>, vector<2x128xf32> -> vector<2x128xf32>
    %204 = arith.addf %54, %203 : vector<2x128xf32>
    %205 = arith.negf %204 : vector<2x128xf32>
    %206 = math.exp %205 : vector<2x128xf32>
    %cst_57 = arith.constant 1.000000e+00 : f32
    %207 = vector.broadcast %cst_57 : f32 to vector<2x128xf32>
    %208 = arith.addf %207, %206 : vector<2x128xf32>
    %209 = arith.divf %207, %208 : vector<2x128xf32>
    %210 = math.tanh %204 : vector<2x128xf32>
    %211 = vector.extract_strided_slice %209 {offsets = [0, 0], sizes = [2, 32], strides = [1, 1]} : vector<2x128xf32> to vector<2x32xf32>
    %212 = vector.extract_strided_slice %209 {offsets = [0, 32], sizes = [2, 32], strides = [1, 1]} : vector<2x128xf32> to vector<2x32xf32>
    %213 = vector.extract_strided_slice %209 {offsets = [0, 96], sizes = [2, 32], strides = [1, 1]} : vector<2x128xf32> to vector<2x32xf32>
    %214 = vector.extract_strided_slice %210 {offsets = [0, 64], sizes = [2, 32], strides = [1, 1]} : vector<2x128xf32> to vector<2x32xf32>
    %215 = arith.mulf %212, %200 : vector<2x32xf32>
    %216 = arith.mulf %211, %214 : vector<2x32xf32>
    %217 = arith.addf %215, %216 : vector<2x32xf32>
    %218 = math.tanh %217 : vector<2x32xf32>
    %219 = arith.mulf %213, %218 : vector<2x32xf32>
    %cst_58 = arith.constant dense<0.000000e+00> : vector<2x128xf32>
    %220 = tpu.matmul %219, %185, %cst_58 {dimension_numbers = #tpu.dot_dimension_numbers<[1], [0], [0], [1], [0, 0, 1, 1], [], []>} : vector<2x32xf32>, vector<32x128xf32>, vector<2x128xf32> -> vector<2x128xf32>
    %221 = arith.addf %74, %220 : vector<2x128xf32>
    %222 = arith.negf %221 : vector<2x128xf32>
    %223 = math.exp %222 : vector<2x128xf32>
    %cst_59 = arith.constant 1.000000e+00 : f32
    %224 = vector.broadcast %cst_59 : f32 to vector<2x128xf32>
    %225 = arith.addf %224, %223 : vector<2x128xf32>
    %226 = arith.divf %224, %225 : vector<2x128xf32>
    %227 = math.tanh %221 : vector<2x128xf32>
    %228 = vector.extract_strided_slice %226 {offsets = [0, 0], sizes = [2, 32], strides = [1, 1]} : vector<2x128xf32> to vector<2x32xf32>
    %229 = vector.extract_strided_slice %226 {offsets = [0, 32], sizes = [2, 32], strides = [1, 1]} : vector<2x128xf32> to vector<2x32xf32>
    %230 = vector.extract_strided_slice %226 {offsets = [0, 96], sizes = [2, 32], strides = [1, 1]} : vector<2x128xf32> to vector<2x32xf32>
    %231 = vector.extract_strided_slice %227 {offsets = [0, 64], sizes = [2, 32], strides = [1, 1]} : vector<2x128xf32> to vector<2x32xf32>
    %232 = arith.mulf %229, %217 : vector<2x32xf32>
    %233 = arith.mulf %228, %231 : vector<2x32xf32>
    %234 = arith.addf %232, %233 : vector<2x32xf32>
    %235 = math.tanh %234 : vector<2x32xf32>
    %236 = arith.mulf %230, %235 : vector<2x32xf32>
    %cst_60 = arith.constant dense<0.000000e+00> : vector<2x128xf32>
    %237 = tpu.matmul %236, %185, %cst_60 {dimension_numbers = #tpu.dot_dimension_numbers<[1], [0], [0], [1], [0, 0, 1, 1], [], []>} : vector<2x32xf32>, vector<32x128xf32>, vector<2x128xf32> -> vector<2x128xf32>
    %238 = arith.addf %94, %237 : vector<2x128xf32>
    %239 = arith.negf %238 : vector<2x128xf32>
    %240 = math.exp %239 : vector<2x128xf32>
    %cst_61 = arith.constant 1.000000e+00 : f32
    %241 = vector.broadcast %cst_61 : f32 to vector<2x128xf32>
    %242 = arith.addf %241, %240 : vector<2x128xf32>
    %243 = arith.divf %241, %242 : vector<2x128xf32>
    %244 = math.tanh %238 : vector<2x128xf32>
    %245 = vector.extract_strided_slice %243 {offsets = [0, 0], sizes = [2, 32], strides = [1, 1]} : vector<2x128xf32> to vector<2x32xf32>
    %246 = vector.extract_strided_slice %243 {offsets = [0, 32], sizes = [2, 32], strides = [1, 1]} : vector<2x128xf32> to vector<2x32xf32>
    %247 = vector.extract_strided_slice %243 {offsets = [0, 96], sizes = [2, 32], strides = [1, 1]} : vector<2x128xf32> to vector<2x32xf32>
    %248 = vector.extract_strided_slice %244 {offsets = [0, 64], sizes = [2, 32], strides = [1, 1]} : vector<2x128xf32> to vector<2x32xf32>
    %249 = arith.mulf %246, %234 : vector<2x32xf32>
    %250 = arith.mulf %245, %248 : vector<2x32xf32>
    %251 = arith.addf %249, %250 : vector<2x32xf32>
    %252 = math.tanh %251 : vector<2x32xf32>
    %253 = arith.mulf %247, %252 : vector<2x32xf32>
    %cst_62 = arith.constant dense<0.000000e+00> : vector<2x128xf32>
    %254 = tpu.matmul %253, %185, %cst_62 {dimension_numbers = #tpu.dot_dimension_numbers<[1], [0], [0], [1], [0, 0, 1, 1], [], []>} : vector<2x32xf32>, vector<32x128xf32>, vector<2x128xf32> -> vector<2x128xf32>
    %255 = arith.addf %114, %254 : vector<2x128xf32>
    %256 = arith.negf %255 : vector<2x128xf32>
    %257 = math.exp %256 : vector<2x128xf32>
    %cst_63 = arith.constant 1.000000e+00 : f32
    %258 = vector.broadcast %cst_63 : f32 to vector<2x128xf32>
    %259 = arith.addf %258, %257 : vector<2x128xf32>
    %260 = arith.divf %258, %259 : vector<2x128xf32>
    %261 = math.tanh %255 : vector<2x128xf32>
    %262 = vector.extract_strided_slice %260 {offsets = [0, 0], sizes = [2, 32], strides = [1, 1]} : vector<2x128xf32> to vector<2x32xf32>
    %263 = vector.extract_strided_slice %260 {offsets = [0, 32], sizes = [2, 32], strides = [1, 1]} : vector<2x128xf32> to vector<2x32xf32>
    %264 = vector.extract_strided_slice %260 {offsets = [0, 96], sizes = [2, 32], strides = [1, 1]} : vector<2x128xf32> to vector<2x32xf32>
    %265 = vector.extract_strided_slice %261 {offsets = [0, 64], sizes = [2, 32], strides = [1, 1]} : vector<2x128xf32> to vector<2x32xf32>
    %266 = arith.mulf %263, %251 : vector<2x32xf32>
    %267 = arith.mulf %262, %265 : vector<2x32xf32>
    %268 = arith.addf %266, %267 : vector<2x32xf32>
    %269 = math.tanh %268 : vector<2x32xf32>
    %270 = arith.mulf %264, %269 : vector<2x32xf32>
    %c0_64 = arith.constant 0 : index
    %c0_65 = arith.constant 0 : index
    %271 = vector.load %arg15[%c0_64, %c0_65] : memref<8x32xf32, #tpu.memory_space<vmem>>, vector<2x32xf32>
    tpu.vector_store %arg15[%c0_64, %c0_65], %270 {strides = array<i32>} : memref<8x32xf32, #tpu.memory_space<vmem>>, vector<2x32xf32>,
    %cst_66 = arith.constant dense<0.000000e+00> : vector<2x128xf32>
    %272 = tpu.matmul %270, %185, %cst_66 {dimension_numbers = #tpu.dot_dimension_numbers<[1], [0], [0], [1], [0, 0, 1, 1], [], []>} : vector<2x32xf32>, vector<32x128xf32>, vector<2x128xf32> -> vector<2x128xf32>
    %273 = arith.addf %134, %272 : vector<2x128xf32>
    %274 = arith.negf %273 : vector<2x128xf32>
    %275 = math.exp %274 : vector<2x128xf32>
    %cst_67 = arith.constant 1.000000e+00 : f32
    %276 = vector.broadcast %cst_67 : f32 to vector<2x128xf32>
    %277 = arith.addf %276, %275 : vector<2x128xf32>
    %278 = arith.divf %276, %277 : vector<2x128xf32>
    %279 = math.tanh %273 : vector<2x128xf32>
    %280 = vector.extract_strided_slice %278 {offsets = [0, 0], sizes = [2, 32], strides = [1, 1]} : vector<2x128xf32> to vector<2x32xf32>
    %281 = vector.extract_strided_slice %278 {offsets = [0, 32], sizes = [2, 32], strides = [1, 1]} : vector<2x128xf32> to vector<2x32xf32>
    %282 = vector.extract_strided_slice %278 {offsets = [0, 96], sizes = [2, 32], strides = [1, 1]} : vector<2x128xf32> to vector<2x32xf32>
    %283 = vector.extract_strided_slice %279 {offsets = [0, 64], sizes = [2, 32], strides = [1, 1]} : vector<2x128xf32> to vector<2x32xf32>
    %284 = arith.mulf %281, %268 : vector<2x32xf32>
    %285 = arith.mulf %280, %283 : vector<2x32xf32>
    %286 = arith.addf %284, %285 : vector<2x32xf32>
    %287 = math.tanh %286 : vector<2x32xf32>
    %288 = arith.mulf %282, %287 : vector<2x32xf32>
    %c2 = arith.constant 2 : index
    %c0_68 = arith.constant 0 : index
    %289 = vector.load %arg15[%c2, %c0_68] : memref<8x32xf32, #tpu.memory_space<vmem>>, vector<2x32xf32>
    tpu.vector_store %arg15[%c2, %c0_68], %288 {strides = array<i32>} : memref<8x32xf32, #tpu.memory_space<vmem>>, vector<2x32xf32>,
    %cst_69 = arith.constant dense<0.000000e+00> : vector<2x128xf32>
    %290 = tpu.matmul %288, %185, %cst_69 {dimension_numbers = #tpu.dot_dimension_numbers<[1], [0], [0], [1], [0, 0, 1, 1], [], []>} : vector<2x32xf32>, vector<32x128xf32>, vector<2x128xf32> -> vector<2x128xf32>
    %291 = arith.addf %154, %290 : vector<2x128xf32>
    %292 = arith.negf %291 : vector<2x128xf32>
    %293 = math.exp %292 : vector<2x128xf32>
    %cst_70 = arith.constant 1.000000e+00 : f32
    %294 = vector.broadcast %cst_70 : f32 to vector<2x128xf32>
    %295 = arith.addf %294, %293 : vector<2x128xf32>
    %296 = arith.divf %294, %295 : vector<2x128xf32>
    %297 = math.tanh %291 : vector<2x128xf32>
    %298 = vector.extract_strided_slice %296 {offsets = [0, 0], sizes = [2, 32], strides = [1, 1]} : vector<2x128xf32> to vector<2x32xf32>
    %299 = vector.extract_strided_slice %296 {offsets = [0, 32], sizes = [2, 32], strides = [1, 1]} : vector<2x128xf32> to vector<2x32xf32>
    %300 = vector.extract_strided_slice %296 {offsets = [0, 96], sizes = [2, 32], strides = [1, 1]} : vector<2x128xf32> to vector<2x32xf32>
    %301 = vector.extract_strided_slice %297 {offsets = [0, 64], sizes = [2, 32], strides = [1, 1]} : vector<2x128xf32> to vector<2x32xf32>
    %302 = arith.mulf %299, %286 : vector<2x32xf32>
    %303 = arith.mulf %298, %301 : vector<2x32xf32>
    %304 = arith.addf %302, %303 : vector<2x32xf32>
    %305 = math.tanh %304 : vector<2x32xf32>
    %306 = arith.mulf %300, %305 : vector<2x32xf32>
    %c4 = arith.constant 4 : index
    %c0_71 = arith.constant 0 : index
    %307 = vector.load %arg15[%c4, %c0_71] : memref<8x32xf32, #tpu.memory_space<vmem>>, vector<2x32xf32>
    tpu.vector_store %arg15[%c4, %c0_71], %306 {strides = array<i32>} : memref<8x32xf32, #tpu.memory_space<vmem>>, vector<2x32xf32>,
    %cst_72 = arith.constant dense<0.000000e+00> : vector<2x128xf32>
    %308 = tpu.matmul %306, %185, %cst_72 {dimension_numbers = #tpu.dot_dimension_numbers<[1], [0], [0], [1], [0, 0, 1, 1], [], []>} : vector<2x32xf32>, vector<32x128xf32>, vector<2x128xf32> -> vector<2x128xf32>
    %309 = arith.addf %174, %308 : vector<2x128xf32>
    %310 = arith.negf %309 : vector<2x128xf32>
    %311 = math.exp %310 : vector<2x128xf32>
    %cst_73 = arith.constant 1.000000e+00 : f32
    %312 = vector.broadcast %cst_73 : f32 to vector<2x128xf32>
    %313 = arith.addf %312, %311 : vector<2x128xf32>
    %314 = arith.divf %312, %313 : vector<2x128xf32>
    %315 = math.tanh %309 : vector<2x128xf32>
    %316 = vector.extract_strided_slice %314 {offsets = [0, 0], sizes = [2, 32], strides = [1, 1]} : vector<2x128xf32> to vector<2x32xf32>
    %317 = vector.extract_strided_slice %314 {offsets = [0, 32], sizes = [2, 32], strides = [1, 1]} : vector<2x128xf32> to vector<2x32xf32>
    %318 = vector.extract_strided_slice %314 {offsets = [0, 96], sizes = [2, 32], strides = [1, 1]} : vector<2x128xf32> to vector<2x32xf32>
    %319 = vector.extract_strided_slice %315 {offsets = [0, 64], sizes = [2, 32], strides = [1, 1]} : vector<2x128xf32> to vector<2x32xf32>
    %320 = arith.mulf %317, %304 : vector<2x32xf32>
    %321 = arith.mulf %316, %319 : vector<2x32xf32>
    %322 = arith.addf %320, %321 : vector<2x32xf32>
    %323 = math.tanh %322 : vector<2x32xf32>
    %324 = arith.mulf %318, %323 : vector<2x32xf32>
    %c6 = arith.constant 6 : index
    %c0_74 = arith.constant 0 : index
    %325 = vector.load %arg15[%c6, %c0_74] : memref<8x32xf32, #tpu.memory_space<vmem>>, vector<2x32xf32>
    tpu.vector_store %arg15[%c6, %c0_74], %324 {strides = array<i32>} : memref<8x32xf32, #tpu.memory_space<vmem>>, vector<2x32xf32>,
    %c1_75 = arith.constant 1 : index
    %c0_76 = arith.constant 0 : index
    %c0_77 = arith.constant 0 : index
    %326 = vector.load %arg13[%c1_75, %c0_76, %c0_77] : memref<2x2x32xf32, #tpu.memory_space<vmem>>, vector<1x2x32xf32>
    %327 = vector.shape_cast %326 : vector<1x2x32xf32> to vector<2x32xf32>
    %328 = vector.shape_cast %324 : vector<2x32xf32> to vector<1x2x32xf32>
    tpu.vector_store %arg13[%c1_75, %c0_76, %c0_77], %328 {strides = array<i32>} : memref<2x2x32xf32, #tpu.memory_space<vmem>>, vector<1x2x32xf32>,
    %c1_78 = arith.constant 1 : index
    %c0_79 = arith.constant 0 : index
    %c0_80 = arith.constant 0 : index
    %329 = vector.load %arg14[%c1_78, %c0_79, %c0_80] : memref<2x2x32xf32, #tpu.memory_space<vmem>>, vector<1x2x32xf32>
    %330 = vector.shape_cast %329 : vector<1x2x32xf32> to vector<2x32xf32>
    %331 = vector.shape_cast %322 : vector<2x32xf32> to vector<1x2x32xf32>
    tpu.vector_store %arg14[%c1_78, %c0_79, %c0_80], %331 {strides = array<i32>} : memref<2x2x32xf32, #tpu.memory_space<vmem>>, vector<1x2x32xf32>,
    %c0_81 = arith.constant 0 : index
    %c0_82 = arith.constant 0 : index
    %332 = vector.load %arg15[%c0_81, %c0_82] : memref<8x32xf32, #tpu.memory_space<vmem>>, vector<8x32xf32>
    %c0_83 = arith.constant 0 : index
    %c0_84 = arith.constant 0 : index
    %333 = vector.load %arg10[%c0_83, %c0_84] : memref<32x8xf32, #tpu.memory_space<vmem>>, vector<32x8xf32>
    %cst_85 = arith.constant dense<0.000000e+00> : vector<8x8xf32>
    %334 = tpu.matmul %332, %333, %cst_85 {dimension_numbers = #tpu.dot_dimension_numbers<[1], [0], [0], [1], [0, 0, 1, 1], [], []>} : vector<8x32xf32>, vector<32x8xf32>, vector<8x8xf32> -> vector<8x8xf32>
    %c0_86 = arith.constant 0 : index
    %c0_87 = arith.constant 0 : index
    %335 = vector.load %arg11[%c0_86, %c0_87] : memref<1x8xf32, #tpu.memory_space<vmem>>, vector<1x8xf32>
    %336 = vector.broadcast %335 : vector<1x8xf32> to vector<8x8xf32>
    %337 = arith.addf %334, %336 : vector<8x8xf32>
    %c0_88 = arith.constant 0 : index
    %c0_89 = arith.constant 0 : index
    %338 = vector.load %arg12[%c0_88, %c0_89] : memref<8x8xf32, #tpu.memory_space<vmem>>, vector<8x8xf32>
    tpu.vector_store %arg12[%c0_88, %c0_89], %337 {strides = array<i32>} : memref<8x8xf32, #tpu.memory_space<vmem>>, vector<8x8xf32>,
    return
  }
  func.func @transform_0(%arg0: i32) -> (i32, i32) {
    %c0_i32 = arith.constant 0 : i32
    %c0_i32_0 = arith.constant 0 : i32
    %c0_i32_1 = arith.constant 0 : i32
    return %c0_i32, %c0_i32_0 : i32, i32
  }
  func.func @transform_1(%arg0: i32) -> (i32, i32, i32) {
    %c0_i32 = arith.constant 0 : i32
    %c0_i32_0 = arith.constant 0 : i32
    %c0_i32_1 = arith.constant 0 : i32
    %c0_i32_2 = arith.constant 0 : i32
    return %c0_i32, %c0_i32_0, %c0_i32_1 : i32, i32, i32
  }
  func.func @transform_2(%arg0: i32) -> (i32, i32, i32) {
    %c0_i32 = arith.constant 0 : i32
    %c0_i32_0 = arith.constant 0 : i32
    %c0_i32_1 = arith.constant 0 : i32
    %c0_i32_2 = arith.constant 0 : i32
    return %c0_i32, %c0_i32_0, %c0_i32_1 : i32, i32, i32
  }
  func.func @transform_3(%arg0: i32) -> (i32, i32) {
    %c0_i32 = arith.constant 0 : i32
    %c0_i32_0 = arith.constant 0 : i32
    %c0_i32_1 = arith.constant 0 : i32
    return %c0_i32, %c0_i32_0 : i32, i32
  }
  func.func @transform_4(%arg0: i32) -> (i32, i32) {
    %c0_i32 = arith.constant 0 : i32
    %c0_i32_0 = arith.constant 0 : i32
    %c0_i32_1 = arith.constant 0 : i32
    return %c0_i32, %c0_i32_0 : i32, i32
  }
  func.func @transform_5(%arg0: i32) -> (i32, i32) {
    %c0_i32 = arith.constant 0 : i32
    %c0_i32_0 = arith.constant 0 : i32
    %c0_i32_1 = arith.constant 0 : i32
    return %c0_i32, %c0_i32_0 : i32, i32
  }
  func.func @transform_6(%arg0: i32) -> (i32, i32) {
    %c0_i32 = arith.constant 0 : i32
    %c0_i32_0 = arith.constant 0 : i32
    %c0_i32_1 = arith.constant 0 : i32
    return %c0_i32, %c0_i32_0 : i32, i32
  }
  func.func @transform_7(%arg0: i32) -> (i32, i32) {
    %c0_i32 = arith.constant 0 : i32
    %c0_i32_0 = arith.constant 0 : i32
    %c0_i32_1 = arith.constant 0 : i32
    return %c0_i32, %c0_i32_0 : i32, i32
  }
  func.func @transform_8(%arg0: i32) -> (i32, i32) {
    %c0_i32 = arith.constant 0 : i32
    %c0_i32_0 = arith.constant 0 : i32
    %c0_i32_1 = arith.constant 0 : i32
    return %c0_i32, %c0_i32_0 : i32, i32
  }
  func.func @transform_9(%arg0: i32) -> (i32, i32) {
    %c0_i32 = arith.constant 0 : i32
    %c0_i32_0 = arith.constant 0 : i32
    %c0_i32_1 = arith.constant 0 : i32
    return %c0_i32, %c0_i32_0 : i32, i32
  }
  func.func @transform_10(%arg0: i32) -> (i32, i32) {
    %c0_i32 = arith.constant 0 : i32
    %c0_i32_0 = arith.constant 0 : i32
    %c0_i32_1 = arith.constant 0 : i32
    return %c0_i32, %c0_i32_0 : i32, i32
  }
  func.func @transform_11(%arg0: i32) -> (i32, i32) {
    %c0_i32 = arith.constant 0 : i32
    %c0_i32_0 = arith.constant 0 : i32
    %c0_i32_1 = arith.constant 0 : i32
    return %c0_i32, %c0_i32_0 : i32, i32
  }
  func.func @transform_12(%arg0: i32) -> (i32, i32, i32) {
    %c0_i32 = arith.constant 0 : i32
    %c0_i32_0 = arith.constant 0 : i32
    %c0_i32_1 = arith.constant 0 : i32
    %c0_i32_2 = arith.constant 0 : i32
    return %c0_i32, %c0_i32_0, %c0_i32_1 : i32, i32, i32
  }
  func.func @transform_13(%arg0: i32) -> (i32, i32, i32) {
    %c0_i32 = arith.constant 0 : i32
    %c0_i32_0 = arith.constant 0 : i32
    %c0_i32_1 = arith.constant 0 : i32
    %c0_i32_2 = arith.constant 0 : i32
    return %c0_i32, %c0_i32_0, %c0_i32_1 : i32, i32, i32
  }
}

</mosaic_0001>

<bundles_post_ra>
// kernel: lstmnet_forward.1
= control target key start
LH: loop header
LB: loop body
LE: loop exit
PB: predicated region body
PF: predicated region fallthrough
CT: control target
= control target key end

     0   :  { %19 = vsyncpa [#allocation4], 0  ;;  %s3851_s0 = inlined_call_operand.vmem [shape: f32[16,8], index: 0, kind: input, shape index: {}]   ;;  %s3852_s1 = inlined_call_operand.vmem [shape: f32[2,2,32], index: 1, kind: input, shape index: {}, may-alias: {1,2}]   ;;  %s3853_s2 = inlined_call_operand.vmem [shape: f32[2,2,32], index: 2, kind: input, shape index: {}, may-alias: {1,2}]   ;;  %s3854_s3 = inlined_call_operand.vmem [shape: f32[8,128], index: 3, kind: input, shape index: {}]   ;;  %s3855_s4 = inlined_call_operand.vmem [shape: f32[1,128], index: 4, kind: input, shape index: {}]   ;;  %s3856_s5 = inlined_call_operand.hbm [shape: f32[32,128], index: 5, kind: input, shape index: {}]   ;;  %s3857_s6 = inlined_call_operand.hbm [shape: f32[32,128], index: 6, kind: input, shape index: {}]   ;;  %s3858_s7 = inlined_call_operand.hbm [shape: f32[32,128], index: 7, kind: input, shape index: {}]   ;;  %s3859_s8 = inlined_call_operand.vmem [shape: f32[1,128], index: 8, kind: input, shape index: {}]   ;;  %s3860_s9 = inlined_call_operand.vmem [shape: f32[32,8], index: 9, kind: input, shape index: {}]   ;;  %s3861_s10 = inlined_call_operand.vmem [shape: f32[1,8], index: 10, kind: input, shape index: {}]   ;;  %s3862_s11 = inlined_call_operand.vmem [shape: f32[8,8], index: 11, kind: output, shape index: {0}]   ;;  %s3863_s12 = inlined_call_operand.hbm [shape: f32[2,2,32], index: 12, kind: output, shape index: {1}]   ;;  %s3864_s13 = inlined_call_operand.hbm [shape: f32[2,2,32], index: 13, kind: output, shape index: {2}]  }
   0x1   :  { %20 = vsyncpa [#allocation7], 0 }
   0x2   :  { %21 = vsyncpa [#allocation5], 0 }
   0x3   :  { %22 = vsyncpa [#allocation11], 0  ;;  %s3275_s25 = smov [#allocation6]   ;;  %s3276_s27 = smov [#allocation3]  }
   0x4   :  { %s50_s26 = sshll.u32 %s3275_s25, 4  ;;  %s38_s28 = sshll.u32 %s3276_s27, 4  ;;  %s51_s26 = int_to_ptr.vmem [resolvable:$true] %s50_s26  ;;  %s39_s28 = int_to_ptr.vmem [resolvable:$true] %s38_s28 }
   0x5   :  { %s3175_s29 = scalar_lea.vmem %s51_s26, 512  ;;  %p3180_p1 = scmp.lt.s32.totalorder %s51_s26, %s51_s26 }
   0x6   :  { %p3176_p0 = scmp.ne.s32.totalorder %s51_s26, %s3175_s29  ;;  %p3181_p2 = scmp.lt.s32.totalorder %s3175_s29, %s3175_s29 }
   0x8   :  { %p3182_p3 = por %p3181_p2, %p3180_p1 }
   0xa   :  { %p3183_p4 = pnand %p3182_p3, %p3176_p0 }
   0xc   :  { %3186 = shalt.err (!%p3183_p4)
}
   0xd   :  { %s3277_s30 = smov 128   ;;  %s3278_s14 = smov 8  }
   0xe   :  { %56 = dma.hbm_to_vmem [thread:$0]  %s3857_s6, 512, %s51_s26, [#allocation7], %s3277_s30, %s3277_s30, %s3278_s14  }
   0xf   :  { %s3195_s17 = scalar_lea.vmem %s39_s28, 512  ;;  %p3200_p6 = scmp.lt.s32.totalorder %s39_s28, %s39_s28 }
  0x10   :  { %p3196_p5 = scmp.ne.s32.totalorder %s39_s28, %s3195_s17  ;;  %p3201_p7 = scmp.lt.s32.totalorder %s3195_s17, %s3195_s17 }
  0x12   :  { %p3202_p8 = por %p3201_p7, %p3200_p6 }
  0x14   :  { %p3203_p9 = pnand %p3202_p8, %p3196_p5 }
  0x16   :  { %3206 = shalt.err (!%p3203_p9)
}
  0x17   :  { %44 = dma.hbm_to_vmem [thread:$0]  %s3856_s5, 512, %s39_s28, [#allocation4], %s3277_s30, %s3277_s30, %s3278_s14  }
  0x18   :  { %s3279_s20 = smov [#allocation8]  }
  0x19   :  { %s62_s21 = sshll.u32 %s3279_s20, 4  ;;  %s63_s21 = int_to_ptr.vmem [resolvable:$true] %s62_s21 }
  0x1a   :  { %s3215_s22 = scalar_lea.vmem %s63_s21, 512  ;;  %p3220_p11 = scmp.lt.s32.totalorder %s63_s21, %s63_s21 }
  0x1b   :  { %p3216_p10 = scmp.ne.s32.totalorder %s63_s21, %s3215_s22  ;;  %p3221_p12 = scmp.lt.s32.totalorder %s3215_s22, %s3215_s22 }
  0x1d   :  { %p3222_p13 = por %p3221_p12, %p3220_p11 }
  0x1f   :  { %p3223_p0 = pnand %p3222_p13, %p3216_p10 }
  0x21   :  { %3226 = shalt.err (!%p3223_p0)
}
  0x22   :  { %68 = dma.hbm_to_vmem [thread:$0]  %s3858_s7, 512, %s63_s21, [#allocation7], %s3277_s30, %s3277_s30, %s3278_s14  }
  0x23   :  { %3267 = dma.done.wait [#allocation4], 512  }
  0x24   :  { %3268 = vsyncadd [#allocation4], 4294966784 }
  0x25   :  { %3269 = dma.done.wait [#allocation7], 1024  }
  0x26   :  { %3270 = vsyncadd [#allocation7], 4294966272  ;;  %v3280_v0 = vmov 0.0   ;;  %vm3281_vm0 = vmmov 0   ;;  %vm94_vm1 = vcmask 64512   ;;  %v86_v1 = vld [vmem:[%s3854_s3] sm:$0xff] }
  0x27   :  { %2751 = vmatprep.subr.mxu1 %v3280_v0  ;;  %2759 = vmatprep.mubr.msk.f32.mxu1 %vm3281_vm0, %v3280_v0  ;;  %v3373_v2 = vld [vmem:[#allocation3 + $0x18] sm:$0xff]  ;;  %v85_v4 = vld [vmem:[%s3851_s0 + $0x8] sm:$0xff]  ;;  %v3382_v5 = vld [vmem:[#allocation3 + $0x10] sm:$0xff]  ;;  %vm193_vm2 = vcmask 261120   ;;  %s3282_s30 = smov 64   ;;  %vm2130_vm3 = vcmask 254976  }
  0x28   :  { %v84_v3 = vld [vmem:[%s3851_s0] sm:$0xff]  ;;  %2746 = vmatprep.subr.mxu0 %v86_v1  ;;  %2752 = vmatpush3.msra.mxu1 %v3373_v2  ;;  %v3387_v6 = vld [vmem:[#allocation3 + $0x8] sm:$0xff]  ;;  %v3392_v7 = vld [vmem:[#allocation3] sm:$0xff]  ;;  %vm1609_vm4 = vcmask 261126   ;;  %s3286_s26 = smov [#allocation10]  }
  0x29   :  { %2747 = vmatpush3.msra.mxu0 %v86_v1  ;;  %2748 = vmatprep.mubr.msk.f32.mxu0 %vm94_vm1, %v84_v3  ;;  %v176_v8 = vld [vmem:[%s3852_s1] sm:$0x3]  ;;  %v3430_v30 = vld [vmem:[#allocation8 + $0x10] sm:$0xff]  ;;  %v3434_v31 = vld [vmem:[#allocation8 + $0x8] sm:$0xff]  ;;  %s2551_s27 = sshll.u32 %s3286_s26, 4  ;;  %s2552_s27 = int_to_ptr.vmem [resolvable:$true] %s2551_s27 }
  0x2a   :  { %2753 = vmatprep.subr.mxu1 %v3280_v0  ;;  %2749 = vmatmul.mubr.msk.f32.vlgmr.msra.gmra.mxu0 %vm94_vm1, %v85_v4  ;;  %v2570_v9 = vld [vmem:[%s3855_s4] ss:$0 sm:$0xff]  ;;  %s3283_s4 = smov 32   ;;  %v3438_v32 = vld [vmem:[#allocation8] sm:$0xff] }
  0x2b   :  { %2754 = vmatpush3.msra.mxu1 %v3382_v5  ;;  %2762 = vmatprep.subr.mxu0 %v3280_v0  ;;  %v177_v18 = vld [vmem:[%s3853_s2] sm:$0x3] }
  0x2c   :  { %2755 = vmatprep.subr.mxu1 %v3280_v0  ;;  %2770 = vmatprep.mubr.msk.f32.mxu0 %vm3281_vm0, %v3280_v0  ;;  %v3428_v29 = vld [vmem:[#allocation8 + $0x18] sm:$0xff] }
  0x2d   :  { %2756 = vmatpush3.msra.mxu1 %v3387_v6  ;;  %2763 = vmatpush3.msra.mxu0 %v3428_v29 }
  0x2e   :  { %2757 = vmatprep.subr.mxu1 %v3280_v0  ;;  %2764 = vmatprep.subr.mxu0 %v3280_v0 }
  0x2f   :  { %2758 = vmatpush3.msra.mxu1 %v3392_v7  ;;  %2765 = vmatpush3.msra.mxu0 %v3430_v30 }
  0x30   :  { %2760 = vmatmul.mubr.msk.f32.vlgmr.msra.gmra.mxu1 %vm193_vm2, %v176_v8  ;;  %2773 = vmatprep.subr.mxu1 %v3280_v0 }
  0x31   :  { %2774 = vmatpush3.msra.mxu1 %v3373_v2  ;;  %2781 = vmatprep.mubr.msk.f32.mxu1 %vm3281_vm0, %v3280_v0 }
  0x32   :  { %2775 = vmatprep.subr.mxu1 %v3280_v0  ;;  %2766 = vmatprep.subr.mxu0 %v3280_v0 }
  0x33   :  { %2776 = vmatpush3.msra.mxu1 %v3382_v5  ;;  %2767 = vmatpush3.msra.mxu0 %v3434_v31 }
  0x34   :  { %2777 = vmatprep.subr.mxu1 %v3280_v0  ;;  %2768 = vmatprep.subr.mxu0 %v3280_v0 }
  0x35   :  { %2778 = vmatpush3.msra.mxu1 %v3387_v6  ;;  %2769 = vmatpush3.msra.mxu0 %v3438_v32 }
  0x36   :  { %2779 = vmatprep.subr.mxu1 %v3280_v0  ;;  %2784 = vmatprep.subr.mxu0 %v3280_v0 }
  0x37   :  { %2780 = vmatpush3.msra.mxu1 %v3392_v7 }
  0x38   :  { %2795 = vmatprep.subr.mxu1 %v3280_v0 }
  0xea   :  { %v2750_v10 = vpop.f32.mrf.mxu0 }
  0xeb   :  { %v3417_v11 = vadd.f32 %v2750_v10, %v2570_v9 }
  0xec   :  { %v167_v12 = vpop.f32.mrf.mxu0 }
  0xed   :  { %v3419_v13 = vadd.f32 %v2570_v9, %v167_v12 }
  0xf0   :  { %v263_v14 = vpop.f32.mrf.mxu1 }
  0xf1   :  { %v267_v15 = vadd.f32 %v263_v14, %v3419_v13 }
  0xf2   :  { %v2761_v16 = vpop.f32.mrf.mxu1 }
  0xf3   :  { %3039 = vtanh.f32 %v267_v15  ;;  %v2575_v19 = vmul.f32 -1.442695, %v267_v15 }
  0xf5   :  { %3041 = vpow2.f32 %v2575_v19 }
 0x100   :  { %v3040_v17 = vpop.eup %3039 }
 0x101   :  { %281 = vrot.lane.b32.xlu0 %v3040_v17, %s3282_s30 }
 0x102   :  { %v3042_v20 = vpop.eup %3041 }
 0x103   :  { %v271_v21 = vadd.f32 1.0, %v3042_v20 }
 0x105   :  { %276 = vrot.lane.b32.xlu0 %v177_v18, %s3283_s4  ;;  %3043 = vrcp.f32 %v271_v21 }
 0x112   :  { %v3044_v22 = vpop.eup %3043 }
 0x173   :  { %v282_v23 = vpop.permute.xlu0 %281 }
 0x174   :  { %v284_v24 = vmul.f32 %v3044_v22, %v282_v23 }
 0x176   :  { %286 = vrot.lane.b32.xlu1 %v284_v24, %s3283_s4 }
 0x177   :  { %v277_v25 = vpop.permute.xlu0 %276 }
 0x178   :  { %v279_v26 = vmul.f32 %v3044_v22, %v277_v25 }
 0x1e8   :  { %v287_v27 = vpop.permute.xlu1 %286 }
 0x1e9   :  { %v289_v28 = vadd.f32 %v287_v27, %v279_v26 }
 0x1eb   :  { %3045 = vtanh.f32 %v289_v28  ;;  %v453_v50 = vrot.slane %v289_v28, 6 }
 0x1f8   :  { %v3046_v33 = vpop.eup %3045 }
 0x1f9   :  { %292 = vrot.lane.b32.xlu1 %v3046_v33, %s3282_s30 }
 0x26b   :  { %v293_v34 = vpop.permute.xlu1 %292 }
 0x26c   :  { %v295_v35 = vmul.f32 %v3044_v22, %v293_v34 }
 0x26e   :  { %297 = vrot.lane.b32.xlu0 %v295_v35, %s3283_s4 }
 0x2e0   :  { %v298_v36 = vpop.permute.xlu0 %297 }
 0x2e1   :  { %2771 = vmatmul.mubr.msk.f32.vlgmr.msra.gmra.mxu0 %vm193_vm2, %v298_v36  ;;  %2782 = vmatmul.mubr.msk.f32.vlgmr.msra.gmra.mxu1 %vm193_vm2, %v298_v36 }
 0x2e2   :  { %2785 = vmatpush3.msra.mxu0 %v3428_v29  ;;  %2796 = vmatpush3.msra.mxu1 %v3373_v2 }
 0x2e3   :  { %2786 = vmatprep.subr.mxu0 %v3280_v0  ;;  %2797 = vmatprep.subr.mxu1 %v3280_v0 }
 0x2e4   :  { %2787 = vmatpush3.msra.mxu0 %v3430_v30  ;;  %2798 = vmatpush3.msra.mxu1 %v3382_v5 }
 0x2e5   :  { %2788 = vmatprep.subr.mxu0 %v3280_v0  ;;  %2799 = vmatprep.subr.mxu1 %v3280_v0 }
 0x2e6   :  { %2789 = vmatpush3.msra.mxu0 %v3434_v31  ;;  %2800 = vmatpush3.msra.mxu1 %v3387_v6 }
 0x2e7   :  { %2790 = vmatprep.subr.mxu0 %v3280_v0  ;;  %2801 = vmatprep.subr.mxu1 %v3280_v0 }
 0x2e8   :  { %2802 = vmatpush3.msra.mxu1 %v3392_v7  ;;  %2803 = vmatprep.mubr.msk.f32.mxu1 %vm3281_vm0, %v3280_v0 }
 0x2e9   :  { %2791 = vmatpush3.msra.mxu0 %v3438_v32  ;;  %2792 = vmatprep.mubr.msk.f32.mxu0 %vm3281_vm0, %v3280_v0 }
 0x2ea   :  { %2806 = vmatprep.subr.mxu0 %v3280_v0  ;;  %2817 = vmatprep.subr.mxu1 %v3280_v0 }
 0x3a1   :  { %v3468_v37 = vpop.f32.mrf.mxu0  ;;  %v437_v38 = vpop.f32.mrf.mxu1 }
 0x3a2   :  { %v442_v39 = vrot.slane %v437_v38, 6 }
 0x3a3   :  { %v2772_v40 = vpop.f32.mrf.mxu0  ;;  %v2783_v41 = vpop.f32.mrf.mxu1 }
 0x3a4   :  { %v444_v42 = vadd.f32 %v442_v39, %v3419_v13 }
 0x3a6   :  { %3047 = vtanh.f32 %v444_v42  ;;  %v2578_v44 = vmul.f32 -1.442695, %v444_v42 }
 0x3a8   :  { %3049 = vpow2.f32 %v2578_v44 }
 0x3b3   :  { %v3048_v43 = vpop.eup %3047 }
 0x3b4   :  { %457 = vrot.lane.b32.xlu1 %v3048_v43, %s3282_s30 }
 0x3b5   :  { %v3050_v45 = vpop.eup %3049 }
 0x3b6   :  { %v448_v46 = vadd.f32 1.0, %v3050_v45 }
 0x3b8   :  { %3051 = vrcp.f32 %v448_v46 }
 0x3c5   :  { %v3052_v47 = vpop.eup %3051 }
 0x3c6   :  { %v455_v51 = vmul.f32 %v3052_v47, %v453_v50 }
 0x426   :  { %v458_v48 = vpop.permute.xlu1 %457 }
 0x427   :  { %v460_v49 = vmul.f32 %v3052_v47, %v458_v48 }
 0x429   :  { %462 = vrot.lane.b32.xlu0 %v460_v49, %s3283_s4 }
 0x49b   :  { %v463_v52 = vpop.permute.xlu0 %462 }
 0x49c   :  { %v465_v53 = vadd.f32 %v463_v52, %v455_v51 }
 0x49e   :  { %3053 = vtanh.f32 %v465_v53  ;;  %v630_v15 = vrot.slane %v465_v53, 6 }
 0x4ab   :  { %v3054_v54 = vpop.eup %3053 }
 0x4ac   :  { %468 = vrot.lane.b32.xlu1 %v3054_v54, %s3282_s30 }
 0x51e   :  { %v469_v55 = vpop.permute.xlu1 %468 }
 0x51f   :  { %v471_v56 = vmul.f32 %v3052_v47, %v469_v55 }
 0x521   :  { %v473_v57 = vrot.slane %v471_v56, 2 }
 0x523   :  { %474 = vrot.lane.b32.xlu0 %v473_v57, %s3283_s4 }
 0x595   :  { %v475_v58 = vpop.permute.xlu0 %474 }
 0x596   :  { %2793 = vmatmul.mubr.msk.f32.vlgmr.msra.gmra.mxu0 %vm193_vm2, %v475_v58  ;;  %2804 = vmatmul.mubr.msk.f32.vlgmr.msra.gmra.mxu1 %vm193_vm2, %v475_v58 }
 0x597   :  { %2807 = vmatpush3.msra.mxu0 %v3428_v29  ;;  %2818 = vmatpush3.msra.mxu1 %v3373_v2 }
 0x598   :  { %2808 = vmatprep.subr.mxu0 %v3280_v0  ;;  %2819 = vmatprep.subr.mxu1 %v3280_v0 }
 0x599   :  { %2809 = vmatpush3.msra.mxu0 %v3430_v30  ;;  %2820 = vmatpush3.msra.mxu1 %v3382_v5 }
 0x59a   :  { %2810 = vmatprep.subr.mxu0 %v3280_v0  ;;  %2821 = vmatprep.subr.mxu1 %v3280_v0 }
 0x59b   :  { %2811 = vmatpush3.msra.mxu0 %v3434_v31  ;;  %2822 = vmatpush3.msra.mxu1 %v3387_v6 }
 0x59c   :  { %2812 = vmatprep.subr.mxu0 %v3280_v0  ;;  %2823 = vmatprep.subr.mxu1 %v3280_v0 }
 0x59d   :  { %2824 = vmatpush3.msra.mxu1 %v3392_v7  ;;  %2825 = vmatprep.mubr.msk.f32.mxu1 %vm3281_vm0, %v3280_v0 }
 0x59e   :  { %2813 = vmatpush3.msra.mxu0 %v3438_v32  ;;  %2814 = vmatprep.mubr.msk.f32.mxu0 %vm3281_vm0, %v3280_v0 }
 0x59f   :  { %2828 = vmatprep.subr.mxu0 %v3280_v0  ;;  %2839 = vmatprep.subr.mxu1 %v3280_v0 }
 0x656   :  { %v3497_v59 = vpop.f32.mrf.mxu0  ;;  %v614_v60 = vpop.f32.mrf.mxu1 }
 0x657   :  { %v619_v61 = vrot.slane %v614_v60, 4 }
 0x658   :  { %v2794_v62 = vpop.f32.mrf.mxu0  ;;  %v2805_v63 = vpop.f32.mrf.mxu1 }
 0x659   :  { %v621_v1 = vadd.f32 %v619_v61, %v3419_v13 }
 0x65b   :  { %3055 = vtanh.f32 %v621_v1  ;;  %v2581_v4 = vmul.f32 -1.442695, %v621_v1 }
 0x65d   :  { %3057 = vpow2.f32 %v2581_v4 }
 0x668   :  { %v3056_v3 = vpop.eup %3055 }
 0x669   :  { %634 = vrot.lane.b32.xlu1 %v3056_v3, %s3282_s30 }
 0x66a   :  { %v3058_v8 = vpop.eup %3057 }
 0x66b   :  { %v625_v9 = vadd.f32 1.0, %v3058_v8 }
 0x66d   :  { %3059 = vrcp.f32 %v625_v9 }
 0x67a   :  { %v3060_v10 = vpop.eup %3059 }
 0x67b   :  { %v632_v16 = vmul.f32 %v3060_v10, %v630_v15 }
 0x6db   :  { %v635_v12 = vpop.permute.xlu1 %634 }
 0x6dc   :  { %v637_v14 = vmul.f32 %v3060_v10, %v635_v12 }
 0x6de   :  { %639 = vrot.lane.b32.xlu0 %v637_v14, %s3283_s4 }
 0x750   :  { %v640_v17 = vpop.permute.xlu0 %639 }
 0x751   :  { %v642_v18 = vadd.f32 %v640_v17, %v632_v16 }
 0x753   :  { %3061 = vtanh.f32 %v642_v18  ;;  %v807_v42 = vrot.slane %v642_v18, 6 }
 0x760   :  { %v3062_v19 = vpop.eup %3061 }
 0x761   :  { %645 = vrot.lane.b32.xlu1 %v3062_v19, %s3282_s30 }
 0x7d3   :  { %v646_v20 = vpop.permute.xlu1 %645 }
 0x7d4   :  { %v648_v21 = vmul.f32 %v3060_v10, %v646_v20 }
 0x7d6   :  { %v650_v22 = vrot.slane %v648_v21, 4 }
 0x7d8   :  { %651 = vrot.lane.b32.xlu0 %v650_v22, %s3283_s4 }
 0x84a   :  { %v652_v23 = vpop.permute.xlu0 %651 }
 0x84b   :  { %2815 = vmatmul.mubr.msk.f32.vlgmr.msra.gmra.mxu0 %vm193_vm2, %v652_v23  ;;  %2826 = vmatmul.mubr.msk.f32.vlgmr.msra.gmra.mxu1 %vm193_vm2, %v652_v23 }
 0x84c   :  { %2829 = vmatpush3.msra.mxu0 %v3428_v29  ;;  %2840 = vmatpush3.msra.mxu1 %v3373_v2 }
 0x84d   :  { %2830 = vmatprep.subr.mxu0 %v3280_v0  ;;  %2841 = vmatprep.subr.mxu1 %v3280_v0 }
 0x84e   :  { %2831 = vmatpush3.msra.mxu0 %v3430_v30  ;;  %2842 = vmatpush3.msra.mxu1 %v3382_v5 }
 0x84f   :  { %2832 = vmatprep.subr.mxu0 %v3280_v0  ;;  %2843 = vmatprep.subr.mxu1 %v3280_v0 }
 0x850   :  { %2833 = vmatpush3.msra.mxu0 %v3434_v31  ;;  %2844 = vmatpush3.msra.mxu1 %v3387_v6 }
 0x851   :  { %2834 = vmatprep.subr.mxu0 %v3280_v0  ;;  %2845 = vmatprep.subr.mxu1 %v3280_v0 }
 0x852   :  { %2846 = vmatpush3.msra.mxu1 %v3392_v7  ;;  %2847 = vmatprep.mubr.msk.f32.mxu1 %vm3281_vm0, %v3280_v0 }
 0x853   :  { %2835 = vmatpush3.msra.mxu0 %v3438_v32  ;;  %2836 = vmatprep.mubr.msk.f32.mxu0 %vm3281_vm0, %v3280_v0 }
 0x854   :  { %2850 = vmatprep.subr.mxu0 %v3280_v0  ;;  %2861 = vmatprep.subr.mxu1 %v3280_v0 }
 0x90b   :  { %v3526_v24 = vpop.f32.mrf.mxu0  ;;  %v791_v25 = vpop.f32.mrf.mxu1 }
 0x90c   :  { %v796_v26 = vrot.slane %v791_v25, 2 }
 0x90d   :  { %v2816_v27 = vpop.f32.mrf.mxu0  ;;  %v2827_v28 = vpop.f32.mrf.mxu1 }
 0x90e   :  { %v798_v33 = vadd.f32 %v796_v26, %v3419_v13 }
 0x910   :  { %3063 = vtanh.f32 %v798_v33  ;;  %v2584_v35 = vmul.f32 -1.442695, %v798_v33 }
 0x912   :  { %3065 = vpow2.f32 %v2584_v35 }
 0x91d   :  { %v3064_v34 = vpop.eup %3063 }
 0x91e   :  { %811 = vrot.lane.b32.xlu1 %v3064_v34, %s3282_s30 }
 0x91f   :  { %v3066_v36 = vpop.eup %3065 }
 0x920   :  { %v802_v38 = vadd.f32 1.0, %v3066_v36 }
 0x922   :  { %3067 = vrcp.f32 %v802_v38 }
 0x92f   :  { %v3068_v39 = vpop.eup %3067 }
 0x930   :  { %v809_v43 = vmul.f32 %v3068_v39, %v807_v42 }
 0x990   :  { %v812_v40 = vpop.permute.xlu1 %811 }
 0x991   :  { %v814_v41 = vmul.f32 %v3068_v39, %v812_v40 }
 0x993   :  { %816 = vrot.lane.b32.xlu0 %v814_v41, %s3283_s4 }
 0xa05   :  { %v817_v44 = vpop.permute.xlu0 %816 }
 0xa06   :  { %v819_v45 = vadd.f32 %v817_v44, %v809_v43 }
 0xa08   :  { %3069 = vtanh.f32 %v819_v45  ;;  %v981_v63 = vrot.slane %v819_v45, 6 }
 0xa15   :  { %v3070_v13 = vpop.eup %3069 }
 0xa16   :  { %822 = vrot.lane.b32.xlu1 %v3070_v13, %s3282_s30 }
 0xa88   :  { %v823_v46 = vpop.permute.xlu1 %822 }
 0xa89   :  { %v825_v47 = vmul.f32 %v3068_v39, %v823_v46 }
 0xa8b   :  { %v827_v48 = vrot.slane %v825_v47, 6 }
 0xa8d   :  { %828 = vrot.lane.b32.xlu0 %v827_v48, %s3283_s4 }
 0xaff   :  { %v829_v49 = vpop.permute.xlu0 %828 }
 0xb00   :  { %2837 = vmatmul.mubr.msk.f32.vlgmr.msra.gmra.mxu0 %vm193_vm2, %v829_v49  ;;  %2848 = vmatmul.mubr.msk.f32.vlgmr.msra.gmra.mxu1 %vm193_vm2, %v829_v49 }
 0xb01   :  { %2851 = vmatpush3.msra.mxu0 %v3428_v29  ;;  %2862 = vmatpush3.msra.mxu1 %v3373_v2 }
 0xb02   :  { %2852 = vmatprep.subr.mxu0 %v3280_v0  ;;  %2863 = vmatprep.subr.mxu1 %v3280_v0 }
 0xb03   :  { %2853 = vmatpush3.msra.mxu0 %v3430_v30  ;;  %2864 = vmatpush3.msra.mxu1 %v3382_v5 }
 0xb04   :  { %2854 = vmatprep.subr.mxu0 %v3280_v0  ;;  %2865 = vmatprep.subr.mxu1 %v3280_v0 }
 0xb05   :  { %2855 = vmatpush3.msra.mxu0 %v3434_v31  ;;  %2866 = vmatpush3.msra.mxu1 %v3387_v6 }
 0xb06   :  { %2856 = vmatprep.subr.mxu0 %v3280_v0  ;;  %2867 = vmatprep.subr.mxu1 %v3280_v0 }
 0xb07   :  { %2868 = vmatpush3.msra.mxu1 %v3392_v7  ;;  %2869 = vmatprep.mubr.msk.f32.mxu1 %vm3281_vm0, %v3280_v0 }
 0xb08   :  { %2857 = vmatpush3.msra.mxu0 %v3438_v32  ;;  %2858 = vmatprep.mubr.msk.f32.mxu0 %vm3281_vm0, %v3280_v0 }
 0xb09   :  { %2872 = vmatprep.subr.mxu0 %v3280_v0  ;;  %2883 = vmatprep.subr.mxu1 %v3280_v0 }
 0xbc0   :  { %v3555_v50 = vpop.f32.mrf.mxu0  ;;  %v968_v51 = vpop.f32.mrf.mxu1 }
 0xbc1   :  { %v972_v52 = vadd.f32 %v968_v51, %v3417_v11 }
 0xbc2   :  { %v2838_v53 = vpop.f32.mrf.mxu0  ;;  %v2849_v54 = vpop.f32.mrf.mxu1 }
 0xbc3   :  { %3071 = vtanh.f32 %v972_v52  ;;  %v2587_v56 = vmul.f32 -1.442695, %v972_v52 }
 0xbc5   :  { %3073 = vpow2.f32 %v2587_v56 }
 0xbd0   :  { %v3072_v55 = vpop.eup %3071 }
 0xbd1   :  { %985 = vrot.lane.b32.xlu1 %v3072_v55, %s3282_s30 }
 0xbd2   :  { %v3074_v57 = vpop.eup %3073 }
 0xbd3   :  { %v976_v58 = vadd.f32 1.0, %v3074_v57 }
 0xbd5   :  { %3075 = vrcp.f32 %v976_v58 }
 0xbe2   :  { %v3076_v60 = vpop.eup %3075 }
 0xbe3   :  { %v983_v1 = vmul.f32 %v3076_v60, %v981_v63  ;;  %v3633_v63 = vld [vmem:[#allocation6 + $0x8] sm:$0xff] }
 0xc43   :  { %v986_v61 = vpop.permute.xlu1 %985 }
 0xc44   :  { %v988_v62 = vmul.f32 %v3076_v60, %v986_v61 }
 0xc46   :  { %990 = vrot.lane.b32.xlu0 %v988_v62, %s3283_s4  ;;  %v3627_v62 = vld [vmem:[#allocation6 + $0x10] sm:$0xff] }
 0xcb8   :  { %v991_v3 = vpop.permute.xlu0 %990 }
 0xcb9   :  { %v993_v4 = vadd.f32 %v991_v3, %v983_v1  ;;  %v3639_v1 = vld [vmem:[#allocation6] sm:$0xff]  ;;  %v2598_v3 = vld [vmem:[%s3852_s1 + $0x2] sm:$0x3] }
 0xcbb   :  { %3077 = vtanh.f32 %v993_v4  ;;  %v1157_v28 = vrot.slane %v993_v4, 6 }
 0xcc8   :  { %v3078_v8 = vpop.eup %3077 }
 0xcc9   :  { %996 = vrot.lane.b32.xlu1 %v3078_v8, %s3282_s30 }
 0xd3b   :  { %v997_v9 = vpop.permute.xlu1 %996 }
 0xd3c   :  { %v999_v10 = vmul.f32 %v3076_v60, %v997_v9  ;;  %v3623_v60 = vld [vmem:[#allocation6 + $0x18] sm:$0xff] }
 0xd3d   :  { %v3673_v9 = vld [vmem:[%s3859_s8] ss:$0 sm:$0xff] }
 0xd3e   :  { %1001 = vrot.lane.b32.xlu0 %v999_v10, %s3283_s4  ;;  %v368_v10 = vadd.f32 %v3673_v9, %v3468_v37 }
 0xdb0   :  { %v1002_v12 = vpop.permute.xlu0 %1001 }
 0xdb1   :  { %2859 = vmatmul.mubr.msk.f32.vlgmr.msra.gmra.mxu0 %vm193_vm2, %v1002_v12  ;;  %2870 = vmatmul.mubr.msk.f32.vlgmr.msra.gmra.mxu1 %vm193_vm2, %v1002_v12 }
 0xdb2   :  { %2873 = vmatpush3.msra.mxu0 %v3428_v29  ;;  %2884 = vmatpush3.msra.mxu1 %v3373_v2 }
 0xdb3   :  { %2874 = vmatprep.subr.mxu0 %v3280_v0  ;;  %2885 = vmatprep.subr.mxu1 %v3280_v0 }
 0xdb4   :  { %2875 = vmatpush3.msra.mxu0 %v3430_v30  ;;  %2886 = vmatpush3.msra.mxu1 %v3382_v5 }
 0xdb5   :  { %2876 = vmatprep.subr.mxu0 %v3280_v0  ;;  %2887 = vmatprep.subr.mxu1 %v3280_v0 }
 0xdb6   :  { %2877 = vmatpush3.msra.mxu0 %v3434_v31  ;;  %2888 = vmatpush3.msra.mxu1 %v3387_v6 }
 0xdb7   :  { %2878 = vmatprep.subr.mxu0 %v3280_v0  ;;  %2889 = vmatprep.subr.mxu1 %v3280_v0 }
 0xdb8   :  { %2890 = vmatpush3.msra.mxu1 %v3392_v7  ;;  %2891 = vmatprep.mubr.msk.f32.mxu1 %vm3281_vm0, %v3280_v0 }
 0xdb9   :  { %2879 = vmatpush3.msra.mxu0 %v3438_v32  ;;  %2880 = vmatprep.mubr.msk.f32.mxu0 %vm3281_vm0, %v3280_v0 }
 0xdba   :  { %2905 = vmatprep.subr.mxu1 %v3280_v0  ;;  %2894 = vmatprep.subr.mxu0 %v3280_v0 }
 0xe71   :  { %v3584_v14 = vpop.f32.mrf.mxu0  ;;  %v1141_v15 = vpop.f32.mrf.mxu1 }
 0xe72   :  { %v1146_v16 = vrot.slane %v1141_v15, 6 }
 0xe73   :  { %v2860_v17 = vpop.f32.mrf.mxu0  ;;  %v2871_v18 = vpop.f32.mrf.mxu1 }
 0xe74   :  { %v1148_v19 = vadd.f32 %v1146_v16, %v3417_v11 }
 0xe76   :  { %3079 = vtanh.f32 %v1148_v19  ;;  %v2590_v21 = vmul.f32 -1.442695, %v1148_v19 }
 0xe78   :  { %3081 = vpow2.f32 %v2590_v21 }
 0xe83   :  { %v3080_v20 = vpop.eup %3079 }
 0xe84   :  { %1161 = vrot.lane.b32.xlu1 %v3080_v20, %s3282_s30 }
 0xe85   :  { %v3082_v22 = vpop.eup %3081 }
 0xe86   :  { %v1152_v23 = vadd.f32 1.0, %v3082_v22 }
 0xe88   :  { %3083 = vrcp.f32 %v1152_v23 }
 0xe95   :  { %v3084_v25 = vpop.eup %3083 }
 0xe96   :  { %v1159_v33 = vmul.f32 %v3084_v25, %v1157_v28 }
 0xef6   :  { %v1162_v26 = vpop.permute.xlu1 %1161 }
 0xef7   :  { %v1164_v27 = vmul.f32 %v3084_v25, %v1162_v26 }
 0xef9   :  { %1166 = vrot.lane.b32.xlu0 %v1164_v27, %s3283_s4 }
 0xf6b   :  { %v1167_v34 = vpop.permute.xlu0 %1166 }
 0xf6c   :  { %v1169_v35 = vadd.f32 %v1167_v34, %v1159_v33 }
 0xf6e   :  { %3085 = vtanh.f32 %v1169_v35  ;;  %v1334_v51 = vrot.slane %v1169_v35, 6 }
 0xf7b   :  { %v3086_v36 = vpop.eup %3085 }
 0xf7c   :  { %1172 = vrot.lane.b32.xlu1 %v3086_v36, %s3282_s30 }
 0xfee   :  { %v1173_v38 = vpop.permute.xlu1 %1172 }
 0xfef   :  { %v1175_v39 = vmul.f32 %v3084_v25, %v1173_v38 }
 0xff1   :  { %v1177_v40 = vrot.slane %v1175_v39, 2 }
 0xff3   :  { %1178 = vrot.lane.b32.xlu0 %v1177_v40, %s3283_s4 }
0x1065   :  { %v1179_v41 = vpop.permute.xlu0 %1178 }
0x1066   :  { %2881 = vmatmul.mubr.msk.f32.vlgmr.msra.gmra.mxu0 %vm193_vm2, %v1179_v41  ;;  %2892 = vmatmul.mubr.msk.f32.vlgmr.msra.gmra.mxu1 %vm193_vm2, %v1179_v41 }
0x1067   :  { %2906 = vmatpush3.msra.mxu1 %v3373_v2  ;;  %2895 = vmatpush3.msra.mxu0 %v3428_v29 }
0x1068   :  { %2907 = vmatprep.subr.mxu1 %v3280_v0  ;;  %2896 = vmatprep.subr.mxu0 %v3280_v0 }
0x1069   :  { %2908 = vmatpush3.msra.mxu1 %v3382_v5  ;;  %2897 = vmatpush3.msra.mxu0 %v3430_v30 }
0x106a   :  { %2909 = vmatprep.subr.mxu1 %v3280_v0  ;;  %2898 = vmatprep.subr.mxu0 %v3280_v0 }
0x106b   :  { %2910 = vmatpush3.msra.mxu1 %v3387_v6  ;;  %2899 = vmatpush3.msra.mxu0 %v3434_v31 }
0x106c   :  { %2911 = vmatprep.subr.mxu1 %v3280_v0  ;;  %2900 = vmatprep.subr.mxu0 %v3280_v0 }
0x106d   :  { %2912 = vmatpush3.msra.mxu1 %v3392_v7  ;;  %2913 = vmatprep.mubr.msk.f32.mxu1 %vm3281_vm0, %v3280_v0 }
0x106e   :  { %2927 = vmatprep.subr.mxu1 %v3280_v0  ;;  %2901 = vmatpush3.msra.mxu0 %v3438_v32 }
0x106f   :  { %2902 = vmatprep.mubr.msk.f32.mxu0 %vm3281_vm0, %v3280_v0  ;;  %2916 = vmatprep.subr.mxu0 %v3280_v0 }
0x1126   :  { %v3613_v2 = vpop.f32.mrf.mxu0  ;;  %v1318_v5 = vpop.f32.mrf.mxu1 }
0x1127   :  { %v1323_v6 = vrot.slane %v1318_v5, 4 }
0x1128   :  { %v2882_v42 = vpop.f32.mrf.mxu0  ;;  %v2893_v43 = vpop.f32.mrf.mxu1 }
0x1129   :  { %v1325_v7 = vadd.f32 %v1323_v6, %v3417_v11 }
0x112b   :  { %3087 = vtanh.f32 %v1325_v7  ;;  %v2593_v45 = vmul.f32 -1.442695, %v1325_v7 }
0x112d   :  { %3089 = vpow2.f32 %v2593_v45 }
0x1138   :  { %v3088_v44 = vpop.eup %3087 }
0x1139   :  { %1338 = vrot.lane.b32.xlu1 %v3088_v44, %s3282_s30 }
0x113a   :  { %v3090_v13 = vpop.eup %3089 }
0x113b   :  { %v1329_v46 = vadd.f32 1.0, %v3090_v13 }
0x113d   :  { %3091 = vrcp.f32 %v1329_v46 }
0x114a   :  { %v3092_v47 = vpop.eup %3091 }
0x114b   :  { %v1336_v52 = vmul.f32 %v3092_v47, %v1334_v51 }
0x11ab   :  { %v1339_v48 = vpop.permute.xlu1 %1338 }
0x11ac   :  { %v1341_v49 = vmul.f32 %v3092_v47, %v1339_v48 }
0x11ae   :  { %1343 = vrot.lane.b32.xlu0 %v1341_v49, %s3283_s4 }
0x1220   :  { %v1344_v53 = vpop.permute.xlu0 %1343 }
0x1221   :  { %v3618_v54 = vadd.f32 %v1344_v53, %v1336_v52  ;;  %v545_v52 = vadd.f32 %v3673_v9, %v3497_v59 }
0x1223   :  { %3093 = vtanh.f32 %v3618_v54  ;;  %v1511_v35 = vrot.slane %v3618_v54, 6 }
0x1230   :  { %v3094_v55 = vpop.eup %3093 }
0x1231   :  { %1349 = vrot.lane.b32.xlu1 %v3094_v55, %s3282_s30 }
0x12a3   :  { %v1350_v56 = vpop.permute.xlu1 %1349 }
0x12a4   :  { %v1352_v57 = vmul.f32 %v3092_v47, %v1350_v56 }
0x12a6   :  { %v1354_v58 = vrot.slane %v1352_v57, 4 }
0x12a8   :  { %1355 = vrot.lane.b32.xlu0 %v1354_v58, %s3283_s4 }
0x131a   :  { %v1356_v61 = vpop.permute.xlu0 %1355 }
0x131b   :  { %2903 = vmatmul.mubr.msk.f32.vlgmr.msra.gmra.mxu0 %vm193_vm2, %v1356_v61  ;;  %2914 = vmatmul.mubr.msk.f32.vlgmr.msra.gmra.mxu1 %vm193_vm2, %v1356_v61 }
0x131c   :  { %2928 = vmatpush3.msra.mxu1 %v3623_v60  ;;  %2935 = vmatprep.mubr.msk.f32.mxu1 %vm3281_vm0, %v3280_v0 }
0x131d   :  { %2929 = vmatprep.subr.mxu1 %v3280_v0  ;;  %2917 = vmatpush3.msra.mxu0 %v3428_v29 }
0x131e   :  { %2930 = vmatpush3.msra.mxu1 %v3627_v62  ;;  %2918 = vmatprep.subr.mxu0 %v3280_v0 }
0x131f   :  { %2931 = vmatprep.subr.mxu1 %v3280_v0  ;;  %2919 = vmatpush3.msra.mxu0 %v3430_v30 }
0x1320   :  { %2932 = vmatpush3.msra.mxu1 %v3633_v63  ;;  %2920 = vmatprep.subr.mxu0 %v3280_v0 }
0x1321   :  { %2933 = vmatprep.subr.mxu1 %v3280_v0  ;;  %2921 = vmatpush3.msra.mxu0 %v3434_v31 }
0x1322   :  { %2934 = vmatpush3.msra.mxu1 %v3639_v1  ;;  %2922 = vmatprep.subr.mxu0 %v3280_v0 }
0x1323   :  { %2936 = vmatmul.mubr.msk.f32.vlgmr.msra.gmra.mxu1 %vm193_vm2, %v2598_v3  ;;  %2923 = vmatpush3.msra.mxu0 %v3438_v32 }
0x1324   :  { %2924 = vmatprep.mubr.msk.f32.mxu0 %vm3281_vm0, %v3280_v0  ;;  %2938 = vmatprep.subr.mxu0 %v3280_v0 }
0x1325   :  { %2949 = vmatprep.subr.mxu1 %v3280_v0  ;;  %2957 = vmatprep.mubr.msk.f32.mxu1 %vm3281_vm0, %v3280_v0 }
0x1326   :  { %2950 = vmatpush3.msra.mxu1 %v3623_v60 }
0x1327   :  { %2951 = vmatprep.subr.mxu1 %v3280_v0 }
0x1328   :  { %2952 = vmatpush3.msra.mxu1 %v3627_v62 }
0x1329   :  { %2953 = vmatprep.subr.mxu1 %v3280_v0 }
0x132a   :  { %2954 = vmatpush3.msra.mxu1 %v3633_v63 }
0x132b   :  { %2955 = vmatprep.subr.mxu1 %v3280_v0 }
0x132c   :  { %2956 = vmatpush3.msra.mxu1 %v3639_v1 }
0x132d   :  { %2971 = vmatprep.subr.mxu1 %v3280_v0 }
0x13db   :  { %v3667_v29 = vpop.f32.mrf.mxu0  ;;  %v1495_v30 = vpop.f32.mrf.mxu1 }
0x13dc   :  { %v1500_v31 = vrot.slane %v1495_v30, 2 }
0x13dd   :  { %v2904_v32 = vpop.f32.mrf.mxu0  ;;  %v2915_v4 = vpop.f32.mrf.mxu1 }
0x13de   :  { %v1502_v8 = vadd.f32 %v1500_v31, %v3417_v11  ;;  %v2599_v11 = vld [vmem:[%s3853_s2 + $0x2] sm:$0x3]  ;;  %s3284_s2 = smov 96  }
0x13e0   :  { %3095 = vtanh.f32 %v1502_v8  ;;  %v2596_v19 = vmul.f32 -1.442695, %v1502_v8 }
0x13e3   :  { %v1693_v12 = vpop.f32.mrf.mxu1 }
0x13e4   :  { %v1697_v15 = vadd.f32 %v1693_v12, %v368_v10 }
0x13e5   :  { %v2937_v16 = vpop.f32.mrf.mxu1 }
0x13e6   :  { %3097 = vtanh.f32 %v1697_v15  ;;  %v2601_v20 = vmul.f32 -1.442695, %v1697_v15  ;;  %v722_v16 = vadd.f32 %v3673_v9, %v3526_v24 }
0x13e7   :  { %3099 = vpow2.f32 %v2596_v19 }
0x13e8   :  { %3101 = vpow2.f32 %v2601_v20 }
0x13ed   :  { %v3096_v17 = vpop.eup %3095 }
0x13ee   :  { %1515 = vrot.lane.b32.xlu1 %v3096_v17, %s3282_s30 }
0x13f3   :  { %v3098_v18 = vpop.eup %3097 }
0x13f4   :  { %1711 = vrot.lane.b32.xlu0 %v3098_v18, %s3282_s30  ;;  %v3100_v37 = vpop.eup %3099 }
0x13f5   :  { %v1506_v21 = vadd.f32 1.0, %v3100_v37  ;;  %v3102_v22 = vpop.eup %3101 }
0x13f6   :  { %v1701_v23 = vadd.f32 1.0, %v3102_v22 }
0x13f7   :  { %3103 = vrcp.f32 %v1506_v21 }
0x13f8   :  { %1706 = vrot.lane.b32.xlu0 %v2599_v11, %s3283_s4  ;;  %3105 = vrcp.f32 %v1701_v23 }
0x1404   :  { %v3104_v25 = vpop.eup %3103 }
0x1405   :  { %v3106_v28 = vpop.eup %3105  ;;  %v1513_v36 = vmul.f32 %v3104_v25, %v1511_v35 }
0x1460   :  { %v1516_v26 = vpop.permute.xlu1 %1515 }
0x1461   :  { %v1518_v27 = vmul.f32 %v3104_v25, %v1516_v26 }
0x1463   :  { %1520 = vrot.lane.b32.xlu1 %v1518_v27, %s3283_s4 }
0x1466   :  { %v1712_v33 = vpop.permute.xlu0 %1711 }
0x1467   :  { %v1714_v34 = vmul.f32 %v3106_v28, %v1712_v33 }
0x1469   :  { %1716 = vrot.lane.b32.xlu1 %v1714_v34, %s3283_s4 }
0x146a   :  { %v1707_v40 = vpop.permute.xlu0 %1706 }
0x146b   :  { %v1709_v41 = vmul.f32 %v3106_v28, %v1707_v40 }
0x14d5   :  { %v1521_v38 = vpop.permute.xlu1 %1520 }
0x14d6   :  { %v3686_v39 = vadd.f32 %v1521_v38, %v1513_v36  ;;  %v899_v36 = vadd.f32 %v3673_v9, %v3555_v50 }
0x14d8   :  { %3107 = vtanh.f32 %v3686_v39 }
0x14db   :  { %v1717_v5 = vpop.permute.xlu1 %1716 }
0x14dc   :  { %v1719_v6 = vadd.f32 %v1717_v5, %v1709_v41 }
0x14de   :  { %3109 = vtanh.f32 %v1719_v6 }
0x14e5   :  { %v3108_v42 = vpop.eup %3107 }
0x14e6   :  { %1526 = vrot.lane.b32.xlu0 %v3108_v42, %s3282_s30 }
0x14eb   :  { %v3110_v43 = vpop.eup %3109 }
0x14ec   :  { %1722 = vrot.lane.b32.xlu1 %v3110_v43, %s3282_s30 }
0x1558   :  { %v1527_v7 = vpop.permute.xlu0 %1526 }
0x1559   :  { %v3691_v44 = vmul.f32 %v3104_v25, %v1527_v7 }
0x155b   :  { %v1531_v45 = vrot.slane %v3691_v44, 6 }
0x155d   :  { %1532 = vrot.lane.b32.xlu0 %v1531_v45, %s3283_s4 }
0x155e   :  { %v1723_v13 = vpop.permute.xlu1 %1722 }
0x155f   :  { %v1725_v46 = vmul.f32 %v3106_v28, %v1723_v13 }
0x1561   :  { %1727 = vrot.lane.b32.xlu1 %v1725_v46, %s3283_s4 }
0x15cf   :  { %v1533_v47 = vpop.permute.xlu0 %1532 }
0x15d0   :  { %2925 = vmatmul.mubr.msk.f32.vlgmr.msra.gmra.mxu0 %vm193_vm2, %v1533_v47 }
0x15d1   :  { %2939 = vmatpush3.msra.mxu0 %v3623_v60  ;;  %2946 = vmatprep.mubr.msk.f32.mxu0 %vm3281_vm0, %v3280_v0 }
0x15d2   :  { %2940 = vmatprep.subr.mxu0 %v3280_v0 }
0x15d3   :  { %2941 = vmatpush3.msra.mxu0 %v3627_v62  ;;  %v1728_v48 = vpop.permute.xlu1 %1727 }
0x15d4   :  { %2942 = vmatprep.subr.mxu0 %v3280_v0 }
0x15d5   :  { %2943 = vmatpush3.msra.mxu0 %v3633_v63 }
0x15d6   :  { %2944 = vmatprep.subr.mxu0 %v3280_v0 }
0x15d7   :  { %2945 = vmatpush3.msra.mxu0 %v3639_v1 }
0x15d8   :  { %2947 = vmatmul.mubr.msk.f32.vlgmr.msra.gmra.mxu0 %vm193_vm2, %v1728_v48  ;;  %2960 = vmatprep.subr.mxu0 %v3280_v0 }
0x15d9   :  { %2961 = vmatpush3.msra.mxu0 %v3623_v60  ;;  %2968 = vmatprep.mubr.msk.f32.mxu0 %vm3281_vm0, %v3280_v0 }
0x15da   :  { %2962 = vmatprep.subr.mxu0 %v3280_v0 }
0x15db   :  { %2963 = vmatpush3.msra.mxu0 %v3627_v62 }
0x15dc   :  { %2964 = vmatprep.subr.mxu0 %v3280_v0 }
0x15dd   :  { %2965 = vmatpush3.msra.mxu0 %v3633_v63 }
0x15de   :  { %2966 = vmatprep.subr.mxu0 %v3280_v0 }
0x15df   :  { %2967 = vmatpush3.msra.mxu0 %v3639_v1 }
0x15e0   :  { %2982 = vmatprep.subr.mxu0 %v3280_v0 }
0x1690   :  { %v3718_v49 = vpop.f32.mrf.mxu0 }
0x1692   :  { %v2926_v51 = vpop.f32.mrf.mxu0 }
0x1698   :  { %v1797_v53 = vpop.f32.mrf.mxu0 }
0x1699   :  { %v1801_v54 = vadd.f32 %v1797_v53, %v545_v52 }
0x169a   :  { %v2948_v55 = vpop.f32.mrf.mxu0 }
0x169b   :  { %3111 = vtanh.f32 %v1801_v54  ;;  %v2603_v57 = vmul.f32 -1.442695, %v1801_v54  ;;  %v1072_v54 = vadd.f32 %v3673_v9, %v3584_v14 }
0x169d   :  { %3113 = vpow2.f32 %v2603_v57 }
0x16a8   :  { %v3112_v56 = vpop.eup %3111 }
0x16a9   :  { %1811 = vrot.lane.b32.xlu0 %v3112_v56, %s3282_s30 }
0x16aa   :  { %v3114_v58 = vpop.eup %3113 }
0x16ab   :  { %v1805_v61 = vadd.f32 1.0, %v3114_v58 }
0x16ad   :  { %3115 = vrcp.f32 %v1805_v61 }
0x16ba   :  { %v3116_v3 = vpop.eup %3115 }
0x16bb   :  { %v1809_v32 = vmul.f32 %v3116_v3, %v1719_v6 }
0x171b   :  { %v1812_v30 = vpop.permute.xlu0 %1811 }
0x171c   :  { %v1814_v31 = vmul.f32 %v3116_v3, %v1812_v30 }
0x171e   :  { %1816 = vrot.lane.b32.xlu1 %v1814_v31, %s3283_s4 }
0x1790   :  { %v1817_v4 = vpop.permute.xlu1 %1816 }
0x1791   :  { %v1819_v59 = vadd.f32 %v1817_v4, %v1809_v32 }
0x1793   :  { %3117 = vtanh.f32 %v1819_v59 }
0x17a0   :  { %v3118_v8 = vpop.eup %3117 }
0x17a1   :  { %1822 = vrot.lane.b32.xlu0 %v3118_v8, %s3282_s30 }
0x1813   :  { %v1823_v10 = vpop.permute.xlu0 %1822 }
0x1814   :  { %v1825_v12 = vmul.f32 %v3116_v3, %v1823_v10 }
0x1816   :  { %1827 = vrot.lane.b32.xlu1 %v1825_v12, %s3283_s4 }
0x1888   :  { %v1828_v15 = vpop.permute.xlu1 %1827 }
0x1889   :  { %2958 = vmatmul.mubr.msk.f32.vlgmr.msra.gmra.mxu1 %vm193_vm2, %v1828_v15 }
0x188a   :  { %2972 = vmatpush3.msra.mxu1 %v3623_v60  ;;  %2979 = vmatprep.mubr.msk.f32.mxu1 %vm3281_vm0, %v3280_v0 }
0x188b   :  { %2973 = vmatprep.subr.mxu1 %v3280_v0 }
0x188c   :  { %2974 = vmatpush3.msra.mxu1 %v3627_v62 }
0x188d   :  { %2975 = vmatprep.subr.mxu1 %v3280_v0 }
0x188e   :  { %2976 = vmatpush3.msra.mxu1 %v3633_v63 }
0x188f   :  { %2977 = vmatprep.subr.mxu1 %v3280_v0 }
0x1890   :  { %2978 = vmatpush3.msra.mxu1 %v3639_v1 }
0x1891   :  { %2993 = vmatprep.subr.mxu1 %v3280_v0 }
0x1949   :  { %v1897_v17 = vpop.f32.mrf.mxu1 }
0x194a   :  { %v1901_v18 = vadd.f32 %v1897_v17, %v722_v16  ;;  %v1249_v17 = vadd.f32 %v3673_v9, %v3613_v2 }
0x194b   :  { %v2959_v11 = vpop.f32.mrf.mxu1 }
0x194c   :  { %3119 = vtanh.f32 %v1901_v18  ;;  %v2605_v20 = vmul.f32 -1.442695, %v1901_v18 }
0x194e   :  { %3121 = vpow2.f32 %v2605_v20 }
0x1959   :  { %v3120_v19 = vpop.eup %3119 }
0x195a   :  { %1911 = vrot.lane.b32.xlu0 %v3120_v19, %s3282_s30 }
0x195b   :  { %v3122_v37 = vpop.eup %3121 }
0x195c   :  { %v1905_v21 = vadd.f32 1.0, %v3122_v37 }
0x195e   :  { %3123 = vrcp.f32 %v1905_v21 }
0x196b   :  { %v3124_v22 = vpop.eup %3123 }
0x196c   :  { %v1909_v26 = vmul.f32 %v3124_v22, %v1819_v59 }
0x19cc   :  { %v1912_v23 = vpop.permute.xlu0 %1911 }
0x19cd   :  { %v1914_v25 = vmul.f32 %v3124_v22, %v1912_v23 }
0x19cf   :  { %1916 = vrot.lane.b32.xlu1 %v1914_v25, %s3283_s4 }
0x1a41   :  { %v1917_v27 = vpop.permute.xlu1 %1916 }
0x1a42   :  { %v1919_v24 = vadd.f32 %v1917_v27, %v1909_v26 }
0x1a44   :  { %3125 = vtanh.f32 %v1919_v24 }
0x1a51   :  { %v3126_v28 = vpop.eup %3125 }
0x1a52   :  { %1922 = vrot.lane.b32.xlu0 %v3126_v28, %s3282_s30  ;;  %v1426_v28 = vadd.f32 %v3673_v9, %v3667_v29 }
0x1ac4   :  { %v1923_v33 = vpop.permute.xlu0 %1922 }
0x1ac5   :  { %v1925_v34 = vmul.f32 %v3124_v22, %v1923_v33 }
0x1ac7   :  { %1927 = vrot.lane.b32.xlu1 %v1925_v34, %s3283_s4 }
0x1b39   :  { %v1928_v35 = vpop.permute.xlu1 %1927 }
0x1b3a   :  { %2969 = vmatmul.mubr.msk.f32.vlgmr.msra.gmra.mxu0 %vm193_vm2, %v1928_v35 }
0x1b3b   :  { %2983 = vmatpush3.msra.mxu0 %v3623_v60  ;;  %2990 = vmatprep.mubr.msk.f32.mxu0 %vm3281_vm0, %v3280_v0 }
0x1b3c   :  { %2984 = vmatprep.subr.mxu0 %v3280_v0 }
0x1b3d   :  { %2985 = vmatpush3.msra.mxu0 %v3627_v62 }
0x1b3e   :  { %2986 = vmatprep.subr.mxu0 %v3280_v0 }
0x1b3f   :  { %2987 = vmatpush3.msra.mxu0 %v3633_v63 }
0x1b40   :  { %2988 = vmatprep.subr.mxu0 %v3280_v0 }
0x1b41   :  { %2989 = vmatpush3.msra.mxu0 %v3639_v1 }
0x1b42   :  { %3004 = vmatprep.subr.mxu0 %v3280_v0 }
0x1bfa   :  { %v1997_v38 = vpop.f32.mrf.mxu0 }
0x1bfb   :  { %v2001_v40 = vadd.f32 %v1997_v38, %v899_v36 }
0x1bfc   :  { %v2970_v41 = vpop.f32.mrf.mxu0 }
0x1bfd   :  { %3127 = vtanh.f32 %v2001_v40  ;;  %v2607_v6 = vmul.f32 -1.442695, %v2001_v40 }
0x1bff   :  { %3129 = vpow2.f32 %v2607_v6 }
0x1c0a   :  { %v3128_v5 = vpop.eup %3127 }
0x1c0b   :  { %2011 = vrot.lane.b32.xlu0 %v3128_v5, %s3282_s30 }
0x1c0c   :  { %v3130_v42 = vpop.eup %3129 }
0x1c0d   :  { %v2005_v43 = vadd.f32 1.0, %v3130_v42 }
0x1c0f   :  { %3131 = vrcp.f32 %v2005_v43 }
0x1c1c   :  { %v3132_v7 = vpop.eup %3131 }
0x1c1d   :  { %v2009_v46 = vmul.f32 %v3132_v7, %v1919_v24 }
0x1c7d   :  { %v2012_v45 = vpop.permute.xlu0 %2011 }
0x1c7e   :  { %v2014_v13 = vmul.f32 %v3132_v7, %v2012_v45 }
0x1c80   :  { %2016 = vrot.lane.b32.xlu1 %v2014_v13, %s3283_s4 }
0x1cf2   :  { %v2017_v47 = vpop.permute.xlu1 %2016 }
0x1cf3   :  { %v2019_v50 = vadd.f32 %v2017_v47, %v2009_v46 }
0x1cf5   :  { %3133 = vtanh.f32 %v2019_v50 }
0x1d02   :  { %v3134_v48 = vpop.eup %3133 }
0x1d03   :  { %2022 = vrot.lane.b32.xlu0 %v3134_v48, %s3282_s30 }
0x1d75   :  { %v2023_v51 = vpop.permute.xlu0 %2022 }
0x1d76   :  { %v2025_v52 = vmul.f32 %v3132_v7, %v2023_v51 }
0x1d78   :  { %2027 = vrot.lane.b32.xlu1 %v2025_v52, %s3283_s4 }
0x1dea   :  { %v2028_v53 = vpop.permute.xlu1 %2027 }
0x1deb   :  { %2980 = vmatmul.mubr.msk.f32.vlgmr.msra.gmra.mxu1 %vm193_vm2, %v2028_v53 }
0x1dec   :  { %2994 = vmatpush3.msra.mxu1 %v3623_v60  ;;  %3001 = vmatprep.mubr.msk.f32.mxu1 %vm3281_vm0, %v3280_v0 }
0x1ded   :  { %2995 = vmatprep.subr.mxu1 %v3280_v0 }
0x1dee   :  { %2996 = vmatpush3.msra.mxu1 %v3627_v62 }
0x1def   :  { %2997 = vmatprep.subr.mxu1 %v3280_v0 }
0x1df0   :  { %2998 = vmatpush3.msra.mxu1 %v3633_v63 }
0x1df1   :  { %2999 = vmatprep.subr.mxu1 %v3280_v0 }
0x1df2   :  { %3000 = vmatpush3.msra.mxu1 %v3639_v1 }
0x1df3   :  { %3015 = vmatprep.subr.mxu1 %v3280_v0 }
0x1eab   :  { %v2097_v55 = vpop.f32.mrf.mxu1 }
0x1eac   :  { %v2101_v56 = vadd.f32 %v2097_v55, %v1072_v54 }
0x1ead   :  { %v2981_v57 = vpop.f32.mrf.mxu1 }
0x1eae   :  { %3135 = vtanh.f32 %v2101_v56  ;;  %v2609_v61 = vmul.f32 -1.442695, %v2101_v56 }
0x1eb0   :  { %3137 = vpow2.f32 %v2609_v61 }
0x1ebb   :  { %v3136_v58 = vpop.eup %3135 }
0x1ebc   :  { %2111 = vrot.lane.b32.xlu0 %v3136_v58, %s3282_s30 }
0x1ebd   :  { %v3138_v3 = vpop.eup %3137 }
0x1ebe   :  { %v2105_v30 = vadd.f32 1.0, %v3138_v3 }
0x1ec0   :  { %3139 = vrcp.f32 %v2105_v30 }
0x1ecd   :  { %v3140_v31 = vpop.eup %3139 }
0x1ece   :  { %v2109_v59 = vmul.f32 %v3140_v31, %v2019_v50  ;;  %v1603_v50 = vadd.f32 %v3673_v9, %v3718_v49 }
0x1f2e   :  { %v2112_v32 = vpop.permute.xlu0 %2111 }
0x1f2f   :  { %v2114_v4 = vmul.f32 %v3140_v31, %v2112_v32  ;;  %v2449_v32 = vld [vmem:[%s3860_s9 + $0x10] sm:$0xff] }
0x1f31   :  { %2116 = vrot.lane.b32.xlu1 %v2114_v4, %s3283_s4  ;;  %v2447_v4 = vld [vmem:[%s3860_s9] sm:$0xff] }
0x1fa3   :  { %v2117_v8 = vpop.permute.xlu1 %2116 }
0x1fa4   :  { %v2119_v14 = vadd.f32 %v2117_v8, %v2109_v59 }
0x1fa6   :  { %3141 = vtanh.f32 %v2119_v14 }
0x1fb3   :  { %v3142_v10 = vpop.eup %3141 }
0x1fb4   :  { %2122 = vrot.lane.b32.xlu0 %v3142_v10, %s3282_s30 }
0x2026   :  { %v2123_v12 = vpop.permute.xlu0 %2122 }
0x2027   :  { %v2125_v15 = vmul.f32 %v3140_v31, %v2123_v12  ;;  %v2450_v31 = vld [vmem:[%s3860_s9 + $0x18] sm:$0xff] }
0x2029   :  { %2127 = vrot.lane.b32.xlu1 %v2125_v15, %s3283_s4 }
0x209b   :  { %v2128_v16 = vpop.permute.xlu1 %2127 }
0x209c   :  { %2131 = vst.msk [vmem:[#allocation2] sm:$0x3] %vm2130_vm3, %v2128_v16  ;;  %2991 = vmatmul.mubr.msk.f32.vlgmr.msra.gmra.mxu0 %vm193_vm2, %v2128_v16 }
0x209d   :  { %3005 = vmatpush3.msra.mxu0 %v3623_v60  ;;  %3012 = vmatprep.mubr.msk.f32.mxu0 %vm3281_vm0, %v3280_v0 }
0x209e   :  { %3006 = vmatprep.subr.mxu0 %v3280_v0 }
0x209f   :  { %3007 = vmatpush3.msra.mxu0 %v3627_v62 }
0x20a0   :  { %3008 = vmatprep.subr.mxu0 %v3280_v0 }
0x20a1   :  { %3009 = vmatpush3.msra.mxu0 %v3633_v63 }
0x20a2   :  { %3010 = vmatprep.subr.mxu0 %v3280_v0 }
0x20a3   :  { %3011 = vmatpush3.msra.mxu0 %v3639_v1 }
0x215c   :  { %v2200_v18 = vpop.f32.mrf.mxu0 }
0x215d   :  { %v2204_v60 = vadd.f32 %v2200_v18, %v1249_v17 }
0x215e   :  { %v2992_v11 = vpop.f32.mrf.mxu0 }
0x215f   :  { %3143 = vtanh.f32 %v2204_v60  ;;  %v2611_v20 = vmul.f32 -1.442695, %v2204_v60 }
0x2161   :  { %3145 = vpow2.f32 %v2611_v20 }
0x216c   :  { %v3144_v19 = vpop.eup %3143 }
0x216d   :  { %2214 = vrot.lane.b32.xlu0 %v3144_v19, %s3282_s30 }
0x216e   :  { %v3146_v62 = vpop.eup %3145 }
0x216f   :  { %v2208_v37 = vadd.f32 1.0, %v3146_v62 }
0x2171   :  { %3147 = vrcp.f32 %v2208_v37 }
0x217e   :  { %v3148_v63 = vpop.eup %3147 }
0x217f   :  { %v2212_v1 = vmul.f32 %v3148_v63, %v2119_v14 }
0x21df   :  { %v2215_v21 = vpop.permute.xlu0 %2214 }
0x21e0   :  { %v2217_v22 = vmul.f32 %v3148_v63, %v2215_v21 }
0x21e2   :  { %2219 = vrot.lane.b32.xlu1 %v2217_v22, %s3283_s4 }
0x2254   :  { %v2220_v23 = vpop.permute.xlu1 %2219 }
0x2255   :  { %v2222_v2 = vadd.f32 %v2220_v23, %v2212_v1 }
0x2257   :  { %3149 = vtanh.f32 %v2222_v2 }
0x2264   :  { %v3150_v25 = vpop.eup %3149 }
0x2265   :  { %2225 = vrot.lane.b32.xlu0 %v3150_v25, %s3282_s30 }
0x22d7   :  { %v2226_v26 = vpop.permute.xlu0 %2225 }
0x22d8   :  { %v2228_v27 = vmul.f32 %v3148_v63, %v2226_v26 }
0x22da   :  { %2230 = vrot.lane.b32.xlu1 %v2228_v27, %s3283_s4 }
0x234c   :  { %v2231_v24 = vpop.permute.xlu1 %2230 }
0x234d   :  { %2233 = vst.msk [vmem:[#allocation2 + $0x2] sm:$0x3] %vm2130_vm3, %v2231_v24  ;;  %3002 = vmatmul.mubr.msk.f32.vlgmr.msra.gmra.mxu1 %vm193_vm2, %v2231_v24 }
0x234e   :  { %3023 = vmatprep.mubr.msk.f32.mxu1 %vm3281_vm0, %v3280_v0  ;;  %3016 = vmatpush3.msra.mxu1 %v2450_v31 }
0x234f   :  { %3017 = vmatprep.subr.mxu1 %v3280_v0 }
0x2350   :  { %3018 = vmatpush3.msra.mxu1 %v2449_v32 }
0x2351   :  { %3019 = vmatprep.subr.mxu1 %v3280_v0 }
0x240d   :  { %v2302_v33 = vpop.f32.mrf.mxu1 }
0x240e   :  { %v2306_v34 = vadd.f32 %v2302_v33, %v1426_v28 }
0x240f   :  { %v3003_v35 = vpop.f32.mrf.mxu1 }
0x2410   :  { %3151 = vtanh.f32 %v2306_v34  ;;  %v2613_v38 = vmul.f32 -1.442695, %v2306_v34 }
0x2412   :  { %3153 = vpow2.f32 %v2613_v38 }
0x241d   :  { %v3152_v36 = vpop.eup %3151 }
0x241e   :  { %2316 = vrot.lane.b32.xlu0 %v3152_v36, %s3282_s30 }
0x241f   :  { %v3154_v40 = vpop.eup %3153 }
0x2420   :  { %v2310_v41 = vadd.f32 1.0, %v3154_v40 }
0x2422   :  { %3155 = vrcp.f32 %v2310_v41 }
0x242f   :  { %v3156_v5 = vpop.eup %3155 }
0x2430   :  { %v2314_v43 = vmul.f32 %v3156_v5, %v2222_v2 }
0x2490   :  { %v2317_v6 = vpop.permute.xlu0 %2316 }
0x2491   :  { %v2319_v42 = vmul.f32 %v3156_v5, %v2317_v6 }
0x2493   :  { %2321 = vrot.lane.b32.xlu1 %v2319_v42, %s3283_s4 }
0x2505   :  { %v2322_v7 = vpop.permute.xlu1 %2321 }
0x2506   :  { %v2324_v29 = vadd.f32 %v2322_v7, %v2314_v43 }
0x2508   :  { %3157 = vtanh.f32 %v2324_v29 }
0x2515   :  { %v3158_v45 = vpop.eup %3157 }
0x2516   :  { %2327 = vrot.lane.b32.xlu0 %v3158_v45, %s3282_s30 }
0x2588   :  { %v2328_v13 = vpop.permute.xlu0 %2327 }
0x2589   :  { %v2330_v46 = vmul.f32 %v3156_v5, %v2328_v13 }
0x258b   :  { %2332 = vrot.lane.b32.xlu1 %v2330_v46, %s3283_s4 }
0x25fd   :  { %v2333_v47 = vpop.permute.xlu1 %2332 }
0x25fe   :  { %2335 = vst.msk [vmem:[#allocation2 + $0x4] sm:$0x3] %vm2130_vm3, %v2333_v47  ;;  %3013 = vmatmul.mubr.msk.f32.vlgmr.msra.gmra.mxu0 %vm193_vm2, %v2333_v47 }
0x26be   :  { %v2404_v48 = vpop.f32.mrf.mxu0 }
0x26bf   :  { %v2408_v51 = vadd.f32 %v2404_v48, %v1603_v50 }
0x26c0   :  { %v3014_v52 = vpop.f32.mrf.mxu0 }
0x26c1   :  { %3159 = vtanh.f32 %v2408_v51  ;;  %v2615_v54 = vmul.f32 -1.442695, %v2408_v51 }
0x26c3   :  { %3161 = vpow2.f32 %v2615_v54 }
0x26ce   :  { %v3160_v53 = vpop.eup %3159 }
0x26cf   :  { %2418 = vrot.lane.b32.xlu0 %v3160_v53, %s3282_s30 }
0x26d0   :  { %v3162_v55 = vpop.eup %3161 }
0x26d1   :  { %v2412_v56 = vadd.f32 1.0, %v3162_v55 }
0x26d3   :  { %3163 = vrcp.f32 %v2412_v56 }
0x26e0   :  { %v3164_v57 = vpop.eup %3163 }
0x26e1   :  { %v2416_v3 = vmul.f32 %v3164_v57, %v2324_v29 }
0x2741   :  { %v2419_v58 = vpop.permute.xlu0 %2418 }
0x2742   :  { %v2421_v61 = vmul.f32 %v3164_v57, %v2419_v58 }
0x2744   :  { %2423 = vrot.lane.b32.xlu1 %v2421_v61, %s3283_s4 }
0x27b6   :  { %v2424_v30 = vpop.permute.xlu1 %2423 }
0x27b7   :  { %v2426_v9 = vadd.f32 %v2424_v30, %v2416_v3 }
0x27b9   :  { %3165 = vtanh.f32 %v2426_v9 }
0x27c6   :  { %v3166_v49 = vpop.eup %3165 }
0x27c7   :  { %2429 = vrot.lane.b32.xlu0 %v3166_v49, %s3282_s30 }
0x27cb   :  { %1606 = vrot.lane.b32.xlu0 %v3691_v44, %s3283_s4  ;;  %v2448_v44 = vld [vmem:[%s3860_s9 + $0x8] sm:$0xff]  ;;  %s3285_s9 = smov [#allocation9]  }
0x27cc   :  { %3020 = vmatpush3.msra.mxu1 %v2448_v44  ;;  %s2539_s7 = sshll.u32 %s3285_s9, 4  ;;  %s2540_s7 = int_to_ptr.vmem [resolvable:$true] %s2539_s7 }
0x27cd   :  { %3021 = vmatprep.subr.mxu1 %v3280_v0  ;;  %s3227_s0 = scalar_lea.vmem %s2540_s7, 64  ;;  %p3232_p2 = scmp.lt.s32.totalorder %s2540_s7, %s2540_s7 }
0x27ce   :  { %3022 = vmatpush3.msra.mxu1 %v2447_v4  ;;  %p3228_p1 = scmp.ne.s32.totalorder %s2540_s7, %s3227_s0  ;;  %p3233_p3 = scmp.lt.s32.totalorder %s3227_s0, %s3227_s0 }
0x27cf   :  { %2441 = vrot.lane.b32.xlu0 %v2426_v9, %s3284_s2 }
0x27d0   :  { %p3234_p4 = por %p3233_p3, %p3232_p2 }
0x27d2   :  { %p3235_p5 = pnand %p3234_p4, %p3228_p1 }
0x2839   :  { %v2430_v59 = vpop.permute.xlu0 %2429 }
0x283a   :  { %v2432_v8 = vmul.f32 %v3164_v57, %v2430_v59 }
0x283c   :  { %2434 = vrot.lane.b32.xlu1 %v2432_v8, %s3283_s4 }
0x283d   :  { %v1607_v14 = vpop.permute.xlu0 %1606 }
0x283e   :  { %1610 = vst.msk [vmem:[#allocation9 - $0x6] sm:$0xc0] %vm1609_vm4, %v1607_v14 }
0x2840   :  { %1612 = vrot.lane.b32.xlu1 %v3686_v39, %s3284_s2 }
0x2841   :  { %v2442_v10 = vpop.permute.xlu0 %2441 }
0x2842   :  { %2445 = vst.msk [vmem:[#allocation10 + $0x2] sm:$0x3] %vm2130_vm3, %v2442_v10 }
0x28ae   :  { %v2435_v12 = vpop.permute.xlu1 %2434 }
0x28af   :  { %2437 = vst.msk [vmem:[#allocation2 + $0x6] sm:$0x3] %vm2130_vm3, %v2435_v12  ;;  %2439 = vst.msk [vmem:[#allocation9 + $0x2] sm:$0x3] %vm2130_vm3, %v2435_v12 }
0x28b2   :  { %v1613_v15 = vpop.permute.xlu1 %1612 }
0x28b3   :  { %1615 = vst.msk [vmem:[#allocation10 - $0x6] sm:$0xc0] %vm1609_vm4, %v1613_v15 }
0x28b6   :  { %v2446_v0 = vld [vmem:[#allocation2] sm:$0xff] }
0x28b7   :  { %3024 = vmatmul.mubr.msk.f32.vlgmr.msra.gmra.mxu1 %vm193_vm2, %v2446_v0 }
0x28b8   :  { %3238 = shalt.err (!%p3235_p5)
}
0x28b9   :  { %s3287_s3 = smov 2   ;;  %s3247_s30 = scalar_lea.vmem %s2552_s27, 64 }
0x28ba   :  { %2545 = dma.vmem_to_hbm [thread:$0]  %s2540_s7, 64, %s3863_s12, [#allocation5], %s3283_s4, %s3283_s4, %s3287_s3  }
0x28bb   :  { %p3248_p6 = scmp.ne.s32.totalorder %s2552_s27, %s3247_s30  ;;  %p3252_p7 = scmp.lt.s32.totalorder %s2552_s27, %s2552_s27 }
0x28bc   :  { %p3253_p8 = scmp.lt.s32.totalorder %s3247_s30, %s3247_s30 }
0x28be   :  { %p3254_p9 = por %p3253_p8, %p3252_p7 }
0x28c0   :  { %p3255_p10 = pnand %p3254_p9, %p3248_p6 }
0x28c2   :  { %3258 = shalt.err (!%p3255_p10)
}
0x28c3   :  { %2557 = dma.vmem_to_hbm [thread:$0]  %s2552_s27, 64, %s3864_s13, [#allocation11], %s3283_s4, %s3283_s4, %s3287_s3  }
0x28c4   :  { %v2616_v39 = vld [vmem:[%s3861_s10] ss:$0 sm:$0xff] }
0x2977   :  { %v2527_v16 = vpop.f32.mrf.mxu1 }
0x2978   :  { %v2528_v17 = vadd.f32 %v2616_v39, %v2527_v16 }
0x2979   :  { %v3025_v18 = vpop.f32.mrf.mxu1 }
0x297a   :  { %2531 = vst.msk [vmem:[%s3862_s11] sm:$0xff] %vm94_vm1, %v2528_v17 }
0x297b   :  { %3271 = dma.done.wait [#allocation5], 64  }
0x297c   :  { %3272 = vsyncadd [#allocation5], 4294967232 }
0x297d   :  { %3273 = dma.done.wait [#allocation11], 64  }
0x297e   :  { %3274 = vsyncadd [#allocation11], 4294967232 }
0x297f   :  { %2566 = vsyncpa [#allocation4], 1 }
0x2980   :  { %2567 = vsyncpa [#allocation7], 1 }
0x2981   :  { %2568 = vsyncpa [#allocation5], 1 }
0x2982   :  { %2569 = vsyncpa [#allocation11], 1 }

</bundles_post_ra>
